<compile_context>
chip_gen: v7x
topology: tpu7x:2x2x1
jax: 0.10.0
libtpu: 0.0.40
codegen_flags: <defaults>
</compile_context>

<pallas_src>
import functools
import math

import numpy as np

import jax
import jax.numpy as jnp
from jax.experimental import pallas as pl
from jax.experimental.pallas import tpu as pltpu


def _pdc_block_kernel(wdw_ref, w2_ref, mask_ref, x_ref, out_ref, *, W, C, Cout):
    """Fused depthwise-3x3 -> ReLU -> 1x1 conv -> residual add (one sample).

    Refs:
      wdw_ref  : SMEM (C*9,)       depthwise taps, index c*9 + kh*3 + kw
      w2_ref   : SMEM (Cout*C,)    pointwise weights, index co*C + c
      mask_ref : VMEM (9, 1, HW)   {0,1} zero-padding masks, one per tap
      x_ref    : VMEM (C, HW)      input sample, image flattened on lanes
      out_ref  : VMEM (Cout, HW)
    """
    HW = x_ref.shape[1]

    # Per-output-channel accumulators, initialized with the residual (Cout==C).
    outs = [x_ref[co:co + 1, :].astype(jnp.float32) for co in range(Cout)]

    for c in range(C):
        xc = x_ref[c:c + 1, :].astype(jnp.float32)          # (1, HW), lane-dense

        # Depthwise 3x3: 9 taps. Each tap is a lane rotation of the flattened
        # image (XLU) + boundary mask (recreates the zero padding) + scalar MAC.
        acc = xc * wdw_ref[c * 9 + 4]                        # center tap
        for kh in range(3):
            for kw in range(3):
                if kh == 1 and kw == 1:
                    continue
                s = (kh - 1) * W + (kw - 1)                  # flat tap offset
                # rolled[p] == xc[(p + s) mod HW]; mask zeroes wrapped/out-of-
                # image positions, giving exact 'same' padding semantics.
                rolled = pltpu.roll(xc, shift=(-s) % HW, axis=1)
                acc = acc + (rolled * mask_ref[kh * 3 + kw]
                             * wdw_ref[c * 9 + kh * 3 + kw])

        yc = jnp.maximum(acc, 0.0)                           # ReLU

        # 1x1 conv: tiny contraction (K=C) -> VPU FMAs with SMEM scalars,
        # skipping the MXU entirely.
        for co in range(Cout):
            outs[co] = outs[co] + yc * w2_ref[co * C + c]

    for co in range(Cout):
        out_ref[co:co + 1, :] = outs[co].astype(out_ref.dtype)


@jax.jit
def pdc_block_forward(x_nchw, w_dw, w_pw):
    """x_nchw: (N, C, H, W); w_dw: (C, 1, 3, 3); w_pw: (Cout, C, 1, 1)."""
    N, C, H, W = x_nchw.shape
    Cout = w_pw.shape[0]
    assert Cout == C, "stride=1 PDCBlock residual requires ouplane == inplane"
    HW = H * W
    itemsize = x_nchw.dtype.itemsize

    # Free re-views (contiguous reshapes, no HBM round trip).
    x_flat = x_nchw.reshape(N, C, HW)
    wdw = w_dw.reshape(C * 9).astype(jnp.float32)            # (C*9,)   -> SMEM
    w2 = w_pw.reshape(Cout * C).astype(jnp.float32)          # (Cout*C,)-> SMEM

    # Zero-padding masks per tap, built at trace time (shape-only constants).
    rr, cc = np.meshgrid(np.arange(H), np.arange(W), indexing="ij")
    masks = np.empty((9, 1, HW), np.float32)
    for kh in range(3):
        for kw in range(3):
            ok = ((rr + kh - 1 >= 0) & (rr + kh - 1 < H) &
                  (cc + kw - 1 >= 0) & (cc + kw - 1 < W))
            masks[kh * 3 + kw, 0, :] = ok.reshape(HW).astype(np.float32)
    masks = jnp.asarray(masks)

    flops = 2 * N * HW * C * 9 + 2 * N * HW * C * Cout + N * HW * Cout
    bytes_accessed = ((N * C * HW + N * Cout * HW) * itemsize
                      + masks.size * 4 + (wdw.size + w2.size) * 4)

    out_flat = pl.pallas_call(
        functools.partial(_pdc_block_kernel, W=W, C=C, Cout=Cout),
        out_shape=jax.ShapeDtypeStruct((N, Cout, HW), x_nchw.dtype),
        grid=(N,),
        in_specs=[
            pl.BlockSpec(memory_space=pltpu.MemorySpace.SMEM),       # wdw
            pl.BlockSpec(memory_space=pltpu.MemorySpace.SMEM),       # w2
            pl.BlockSpec((9, 1, HW), lambda n: (0, 0, 0)),           # masks
            pl.BlockSpec((None, C, HW), lambda n: (n, 0, 0)),        # x sample
        ],
        out_specs=pl.BlockSpec((None, Cout, HW), lambda n: (n, 0, 0)),
        compiler_params=pltpu.CompilerParams(
            dimension_semantics=("parallel",),
            vmem_limit_bytes=32 * 1024 * 1024,
        ),
        cost_estimate=pl.CostEstimate(
            flops=flops, transcendentals=0, bytes_accessed=bytes_accessed),
    )(wdw, w2, masks, x_flat)

    return out_flat.reshape(N, Cout, H, W)       # free re-view back to NCHW


def _reference_forward(x, w_dw, w_pw):
    """Pure-JAX reference (mirrors the PyTorch forward with pdc = F.conv2d)."""
    C = x.shape[1]
    y = jax.lax.conv_general_dilated(
        x, w_dw, window_strides=(1, 1), padding=((1, 1), (1, 1)),
        dimension_numbers=("NCHW", "OIHW", "NCHW"), feature_group_count=C)
    y = jnp.maximum(y, 0.0)
    y = jax.lax.conv_general_dilated(
        y, w_pw, window_strides=(1, 1), padding="VALID",
        dimension_numbers=("NCHW", "OIHW", "NCHW"))
    return y + x


def _kaiming_uniform_like(key, shape):
    """Deterministic stand-in for nn.init.kaiming_uniform_(a=sqrt(5))."""
    fan_in = shape[1] * shape[2] * shape[3]
    bound = 1.0 / math.sqrt(fan_in)
    return jax.random.uniform(key, shape, jnp.float32, -bound, bound)


if __name__ == "__main__":
    key = jax.random.PRNGKey(0)
    k_x, k_w1, k_w2 = jax.random.split(key, 3)

    N, C, H, W = 2, 4, 16, 16          # inplane == ouplane == 4, stride=1
    x = jax.random.normal(k_x, (N, C, H, W), jnp.float32)

    # conv1: depthwise 3x3, groups=C  -> weight shape (C, 1, 3, 3)
    w_dw = _kaiming_uniform_like(k_w1, (C, 1, 3, 3))
    # conv2: 1x1 pointwise, C -> C    -> weight shape (C, C, 1, 1)
    w_pw = _kaiming_uniform_like(k_w2, (C, C, 1, 1))

    out = jax.block_until_ready(pdc_block_forward(x, w_dw, w_pw))
    ref = jax.block_until_ready(_reference_forward(x, w_dw, w_pw))

    assert out.shape == (N, C, H, W)
    assert jnp.allclose(out, ref, atol=1e-5, rtol=1e-5), (
        f"max abs err = {jnp.max(jnp.abs(out - ref))}")

    print("KERNEL_OK")
</pallas_src>

<mosaic_0001>
module attributes {stable_mosaic.version = 11 : i64} {
  func.func @_pdc_block_kernel(%arg0: i32, %arg1: memref<36xf32, #tpu.memory_space<smem>>, %arg2: memref<16xf32, #tpu.memory_space<smem>>, %arg3: memref<9x1x256xf32, #tpu.memory_space<vmem>>, %arg4: memref<1x4x256xf32, #tpu.memory_space<vmem>>, %arg5: memref<1x4x256xf32, #tpu.memory_space<vmem>>) attributes {dimension_semantics = [#tpu.dimension_semantics<parallel>], iteration_bounds = array<i64: 2>, scalar_prefetch = 0 : i64, scratch_operands = 0 : i64, tpu.core_type = #tpu.core_type<tc>, window_params = [{transform_indices = @transform_0, window_bounds = array<i64: 36>}, {transform_indices = @transform_1, window_bounds = array<i64: 16>}, {pipeline_mode = #tpu.pipeline_mode<synchronous>, transform_indices = @transform_2, window_bounds = array<i64: 9, 1, 256>}, {transform_indices = @transform_3, window_bounds = array<i64: 1, 4, 256>}, {transform_indices = @transform_4, window_bounds = array<i64: 1, 4, 256>}]} {
    %c0 = arith.constant 0 : index
    %c0_0 = arith.constant 0 : index
    %c0_1 = arith.constant 0 : index
    %0 = vector.load %arg4[%c0, %c0_0, %c0_1] : memref<1x4x256xf32, #tpu.memory_space<vmem>>, vector<1x1x256xf32>
    %1 = vector.shape_cast %0 : vector<1x1x256xf32> to vector<1x256xf32>
    %c0_2 = arith.constant 0 : index
    %c1 = arith.constant 1 : index
    %c0_3 = arith.constant 0 : index
    %2 = vector.load %arg4[%c0_2, %c1, %c0_3] : memref<1x4x256xf32, #tpu.memory_space<vmem>>, vector<1x1x256xf32>
    %3 = vector.shape_cast %2 : vector<1x1x256xf32> to vector<1x256xf32>
    %c0_4 = arith.constant 0 : index
    %c2 = arith.constant 2 : index
    %c0_5 = arith.constant 0 : index
    %4 = vector.load %arg4[%c0_4, %c2, %c0_5] : memref<1x4x256xf32, #tpu.memory_space<vmem>>, vector<1x1x256xf32>
    %5 = vector.shape_cast %4 : vector<1x1x256xf32> to vector<1x256xf32>
    %c0_6 = arith.constant 0 : index
    %c3 = arith.constant 3 : index
    %c0_7 = arith.constant 0 : index
    %6 = vector.load %arg4[%c0_6, %c3, %c0_7] : memref<1x4x256xf32, #tpu.memory_space<vmem>>, vector<1x1x256xf32>
    %7 = vector.shape_cast %6 : vector<1x1x256xf32> to vector<1x256xf32>
    %c0_8 = arith.constant 0 : index
    %c0_9 = arith.constant 0 : index
    %c0_10 = arith.constant 0 : index
    %8 = vector.load %arg4[%c0_8, %c0_9, %c0_10] : memref<1x4x256xf32, #tpu.memory_space<vmem>>, vector<1x1x256xf32>
    %9 = vector.shape_cast %8 : vector<1x1x256xf32> to vector<1x256xf32>
    %c4 = arith.constant 4 : index
    %10 = memref.load %arg1[%c4] : memref<36xf32, #tpu.memory_space<smem>>
    %11 = vector.broadcast %10 : f32 to vector<1x256xf32>
    %12 = arith.mulf %9, %11 : vector<1x256xf32>
    %c17_i32 = arith.constant 17 : i32
    %13 = tpu.dynamic_rotate %9 by %c17_i32 dim 1 : vector<1x256xf32>, i32 -> vector<1x256xf32>
    %c0_11 = arith.constant 0 : index
    %c0_12 = arith.constant 0 : index
    %c0_13 = arith.constant 0 : index
    %14 = vector.load %arg3[%c0_11, %c0_12, %c0_13] : memref<9x1x256xf32, #tpu.memory_space<vmem>>, vector<1x1x256xf32>
    %15 = vector.shape_cast %14 : vector<1x1x256xf32> to vector<1x256xf32>
    %16 = arith.mulf %13, %15 : vector<1x256xf32>
    %c0_14 = arith.constant 0 : index
    %17 = memref.load %arg1[%c0_14] : memref<36xf32, #tpu.memory_space<smem>>
    %18 = vector.broadcast %17 : f32 to vector<1x256xf32>
    %19 = arith.mulf %16, %18 : vector<1x256xf32>
    %20 = arith.addf %12, %19 : vector<1x256xf32>
    %c16_i32 = arith.constant 16 : i32
    %21 = tpu.dynamic_rotate %9 by %c16_i32 dim 1 : vector<1x256xf32>, i32 -> vector<1x256xf32>
    %c1_15 = arith.constant 1 : index
    %c0_16 = arith.constant 0 : index
    %c0_17 = arith.constant 0 : index
    %22 = vector.load %arg3[%c1_15, %c0_16, %c0_17] : memref<9x1x256xf32, #tpu.memory_space<vmem>>, vector<1x1x256xf32>
    %23 = vector.shape_cast %22 : vector<1x1x256xf32> to vector<1x256xf32>
    %24 = arith.mulf %21, %23 : vector<1x256xf32>
    %c1_18 = arith.constant 1 : index
    %25 = memref.load %arg1[%c1_18] : memref<36xf32, #tpu.memory_space<smem>>
    %26 = vector.broadcast %25 : f32 to vector<1x256xf32>
    %27 = arith.mulf %24, %26 : vector<1x256xf32>
    %28 = arith.addf %20, %27 : vector<1x256xf32>
    %c15_i32 = arith.constant 15 : i32
    %29 = tpu.dynamic_rotate %9 by %c15_i32 dim 1 : vector<1x256xf32>, i32 -> vector<1x256xf32>
    %c2_19 = arith.constant 2 : index
    %c0_20 = arith.constant 0 : index
    %c0_21 = arith.constant 0 : index
    %30 = vector.load %arg3[%c2_19, %c0_20, %c0_21] : memref<9x1x256xf32, #tpu.memory_space<vmem>>, vector<1x1x256xf32>
    %31 = vector.shape_cast %30 : vector<1x1x256xf32> to vector<1x256xf32>
    %32 = arith.mulf %29, %31 : vector<1x256xf32>
    %c2_22 = arith.constant 2 : index
    %33 = memref.load %arg1[%c2_22] : memref<36xf32, #tpu.memory_space<smem>>
    %34 = vector.broadcast %33 : f32 to vector<1x256xf32>
    %35 = arith.mulf %32, %34 : vector<1x256xf32>
    %36 = arith.addf %28, %35 : vector<1x256xf32>
    %c1_i32 = arith.constant 1 : i32
    %37 = tpu.dynamic_rotate %9 by %c1_i32 dim 1 : vector<1x256xf32>, i32 -> vector<1x256xf32>
    %c3_23 = arith.constant 3 : index
    %c0_24 = arith.constant 0 : index
    %c0_25 = arith.constant 0 : index
    %38 = vector.load %arg3[%c3_23, %c0_24, %c0_25] : memref<9x1x256xf32, #tpu.memory_space<vmem>>, vector<1x1x256xf32>
    %39 = vector.shape_cast %38 : vector<1x1x256xf32> to vector<1x256xf32>
    %40 = arith.mulf %37, %39 : vector<1x256xf32>
    %c3_26 = arith.constant 3 : index
    %41 = memref.load %arg1[%c3_26] : memref<36xf32, #tpu.memory_space<smem>>
    %42 = vector.broadcast %41 : f32 to vector<1x256xf32>
    %43 = arith.mulf %40, %42 : vector<1x256xf32>
    %44 = arith.addf %36, %43 : vector<1x256xf32>
    %c255_i32 = arith.constant 255 : i32
    %45 = tpu.dynamic_rotate %9 by %c255_i32 dim 1 : vector<1x256xf32>, i32 -> vector<1x256xf32>
    %c5 = arith.constant 5 : index
    %c0_27 = arith.constant 0 : index
    %c0_28 = arith.constant 0 : index
    %46 = vector.load %arg3[%c5, %c0_27, %c0_28] : memref<9x1x256xf32, #tpu.memory_space<vmem>>, vector<1x1x256xf32>
    %47 = vector.shape_cast %46 : vector<1x1x256xf32> to vector<1x256xf32>
    %48 = arith.mulf %45, %47 : vector<1x256xf32>
    %c5_29 = arith.constant 5 : index
    %49 = memref.load %arg1[%c5_29] : memref<36xf32, #tpu.memory_space<smem>>
    %50 = vector.broadcast %49 : f32 to vector<1x256xf32>
    %51 = arith.mulf %48, %50 : vector<1x256xf32>
    %52 = arith.addf %44, %51 : vector<1x256xf32>
    %c241_i32 = arith.constant 241 : i32
    %53 = tpu.dynamic_rotate %9 by %c241_i32 dim 1 : vector<1x256xf32>, i32 -> vector<1x256xf32>
    %c6 = arith.constant 6 : index
    %c0_30 = arith.constant 0 : index
    %c0_31 = arith.constant 0 : index
    %54 = vector.load %arg3[%c6, %c0_30, %c0_31] : memref<9x1x256xf32, #tpu.memory_space<vmem>>, vector<1x1x256xf32>
    %55 = vector.shape_cast %54 : vector<1x1x256xf32> to vector<1x256xf32>
    %56 = arith.mulf %53, %55 : vector<1x256xf32>
    %c6_32 = arith.constant 6 : index
    %57 = memref.load %arg1[%c6_32] : memref<36xf32, #tpu.memory_space<smem>>
    %58 = vector.broadcast %57 : f32 to vector<1x256xf32>
    %59 = arith.mulf %56, %58 : vector<1x256xf32>
    %60 = arith.addf %52, %59 : vector<1x256xf32>
    %c240_i32 = arith.constant 240 : i32
    %61 = tpu.dynamic_rotate %9 by %c240_i32 dim 1 : vector<1x256xf32>, i32 -> vector<1x256xf32>
    %c7 = arith.constant 7 : index
    %c0_33 = arith.constant 0 : index
    %c0_34 = arith.constant 0 : index
    %62 = vector.load %arg3[%c7, %c0_33, %c0_34] : memref<9x1x256xf32, #tpu.memory_space<vmem>>, vector<1x1x256xf32>
    %63 = vector.shape_cast %62 : vector<1x1x256xf32> to vector<1x256xf32>
    %64 = arith.mulf %61, %63 : vector<1x256xf32>
    %c7_35 = arith.constant 7 : index
    %65 = memref.load %arg1[%c7_35] : memref<36xf32, #tpu.memory_space<smem>>
    %66 = vector.broadcast %65 : f32 to vector<1x256xf32>
    %67 = arith.mulf %64, %66 : vector<1x256xf32>
    %68 = arith.addf %60, %67 : vector<1x256xf32>
    %c239_i32 = arith.constant 239 : i32
    %69 = tpu.dynamic_rotate %9 by %c239_i32 dim 1 : vector<1x256xf32>, i32 -> vector<1x256xf32>
    %c8 = arith.constant 8 : index
    %c0_36 = arith.constant 0 : index
    %c0_37 = arith.constant 0 : index
    %70 = vector.load %arg3[%c8, %c0_36, %c0_37] : memref<9x1x256xf32, #tpu.memory_space<vmem>>, vector<1x1x256xf32>
    %71 = vector.shape_cast %70 : vector<1x1x256xf32> to vector<1x256xf32>
    %72 = arith.mulf %69, %71 : vector<1x256xf32>
    %c8_38 = arith.constant 8 : index
    %73 = memref.load %arg1[%c8_38] : memref<36xf32, #tpu.memory_space<smem>>
    %74 = vector.broadcast %73 : f32 to vector<1x256xf32>
    %75 = arith.mulf %72, %74 : vector<1x256xf32>
    %76 = arith.addf %68, %75 : vector<1x256xf32>
    %cst = arith.constant 0.000000e+00 : f32
    %77 = vector.broadcast %cst : f32 to vector<1x256xf32>
    %78 = arith.maximumf %76, %77 : vector<1x256xf32>
    %c0_39 = arith.constant 0 : index
    %79 = memref.load %arg2[%c0_39] : memref<16xf32, #tpu.memory_space<smem>>
    %80 = vector.broadcast %79 : f32 to vector<1x256xf32>
    %81 = arith.mulf %78, %80 : vector<1x256xf32>
    %82 = arith.addf %1, %81 : vector<1x256xf32>
    %c4_40 = arith.constant 4 : index
    %83 = memref.load %arg2[%c4_40] : memref<16xf32, #tpu.memory_space<smem>>
    %84 = vector.broadcast %83 : f32 to vector<1x256xf32>
    %85 = arith.mulf %78, %84 : vector<1x256xf32>
    %86 = arith.addf %3, %85 : vector<1x256xf32>
    %c8_41 = arith.constant 8 : index
    %87 = memref.load %arg2[%c8_41] : memref<16xf32, #tpu.memory_space<smem>>
    %88 = vector.broadcast %87 : f32 to vector<1x256xf32>
    %89 = arith.mulf %78, %88 : vector<1x256xf32>
    %90 = arith.addf %5, %89 : vector<1x256xf32>
    %c12 = arith.constant 12 : index
    %91 = memref.load %arg2[%c12] : memref<16xf32, #tpu.memory_space<smem>>
    %92 = vector.broadcast %91 : f32 to vector<1x256xf32>
    %93 = arith.mulf %78, %92 : vector<1x256xf32>
    %94 = arith.addf %7, %93 : vector<1x256xf32>
    %c0_42 = arith.constant 0 : index
    %c1_43 = arith.constant 1 : index
    %c0_44 = arith.constant 0 : index
    %95 = vector.load %arg4[%c0_42, %c1_43, %c0_44] : memref<1x4x256xf32, #tpu.memory_space<vmem>>, vector<1x1x256xf32>
    %96 = vector.shape_cast %95 : vector<1x1x256xf32> to vector<1x256xf32>
    %c13 = arith.constant 13 : index
    %97 = memref.load %arg1[%c13] : memref<36xf32, #tpu.memory_space<smem>>
    %98 = vector.broadcast %97 : f32 to vector<1x256xf32>
    %99 = arith.mulf %96, %98 : vector<1x256xf32>
    %c17_i32_45 = arith.constant 17 : i32
    %100 = tpu.dynamic_rotate %96 by %c17_i32_45 dim 1 : vector<1x256xf32>, i32 -> vector<1x256xf32>
    %c0_46 = arith.constant 0 : index
    %c0_47 = arith.constant 0 : index
    %c0_48 = arith.constant 0 : index
    %101 = vector.load %arg3[%c0_46, %c0_47, %c0_48] : memref<9x1x256xf32, #tpu.memory_space<vmem>>, vector<1x1x256xf32>
    %102 = vector.shape_cast %101 : vector<1x1x256xf32> to vector<1x256xf32>
    %103 = arith.mulf %100, %102 : vector<1x256xf32>
    %c9 = arith.constant 9 : index
    %104 = memref.load %arg1[%c9] : memref<36xf32, #tpu.memory_space<smem>>
    %105 = vector.broadcast %104 : f32 to vector<1x256xf32>
    %106 = arith.mulf %103, %105 : vector<1x256xf32>
    %107 = arith.addf %99, %106 : vector<1x256xf32>
    %c16_i32_49 = arith.constant 16 : i32
    %108 = tpu.dynamic_rotate %96 by %c16_i32_49 dim 1 : vector<1x256xf32>, i32 -> vector<1x256xf32>
    %c1_50 = arith.constant 1 : index
    %c0_51 = arith.constant 0 : index
    %c0_52 = arith.constant 0 : index
    %109 = vector.load %arg3[%c1_50, %c0_51, %c0_52] : memref<9x1x256xf32, #tpu.memory_space<vmem>>, vector<1x1x256xf32>
    %110 = vector.shape_cast %109 : vector<1x1x256xf32> to vector<1x256xf32>
    %111 = arith.mulf %108, %110 : vector<1x256xf32>
    %c10 = arith.constant 10 : index
    %112 = memref.load %arg1[%c10] : memref<36xf32, #tpu.memory_space<smem>>
    %113 = vector.broadcast %112 : f32 to vector<1x256xf32>
    %114 = arith.mulf %111, %113 : vector<1x256xf32>
    %115 = arith.addf %107, %114 : vector<1x256xf32>
    %c15_i32_53 = arith.constant 15 : i32
    %116 = tpu.dynamic_rotate %96 by %c15_i32_53 dim 1 : vector<1x256xf32>, i32 -> vector<1x256xf32>
    %c2_54 = arith.constant 2 : index
    %c0_55 = arith.constant 0 : index
    %c0_56 = arith.constant 0 : index
    %117 = vector.load %arg3[%c2_54, %c0_55, %c0_56] : memref<9x1x256xf32, #tpu.memory_space<vmem>>, vector<1x1x256xf32>
    %118 = vector.shape_cast %117 : vector<1x1x256xf32> to vector<1x256xf32>
    %119 = arith.mulf %116, %118 : vector<1x256xf32>
    %c11 = arith.constant 11 : index
    %120 = memref.load %arg1[%c11] : memref<36xf32, #tpu.memory_space<smem>>
    %121 = vector.broadcast %120 : f32 to vector<1x256xf32>
    %122 = arith.mulf %119, %121 : vector<1x256xf32>
    %123 = arith.addf %115, %122 : vector<1x256xf32>
    %c1_i32_57 = arith.constant 1 : i32
    %124 = tpu.dynamic_rotate %96 by %c1_i32_57 dim 1 : vector<1x256xf32>, i32 -> vector<1x256xf32>
    %c3_58 = arith.constant 3 : index
    %c0_59 = arith.constant 0 : index
    %c0_60 = arith.constant 0 : index
    %125 = vector.load %arg3[%c3_58, %c0_59, %c0_60] : memref<9x1x256xf32, #tpu.memory_space<vmem>>, vector<1x1x256xf32>
    %126 = vector.shape_cast %125 : vector<1x1x256xf32> to vector<1x256xf32>
    %127 = arith.mulf %124, %126 : vector<1x256xf32>
    %c12_61 = arith.constant 12 : index
    %128 = memref.load %arg1[%c12_61] : memref<36xf32, #tpu.memory_space<smem>>
    %129 = vector.broadcast %128 : f32 to vector<1x256xf32>
    %130 = arith.mulf %127, %129 : vector<1x256xf32>
    %131 = arith.addf %123, %130 : vector<1x256xf32>
    %c255_i32_62 = arith.constant 255 : i32
    %132 = tpu.dynamic_rotate %96 by %c255_i32_62 dim 1 : vector<1x256xf32>, i32 -> vector<1x256xf32>
    %c5_63 = arith.constant 5 : index
    %c0_64 = arith.constant 0 : index
    %c0_65 = arith.constant 0 : index
    %133 = vector.load %arg3[%c5_63, %c0_64, %c0_65] : memref<9x1x256xf32, #tpu.memory_space<vmem>>, vector<1x1x256xf32>
    %134 = vector.shape_cast %133 : vector<1x1x256xf32> to vector<1x256xf32>
    %135 = arith.mulf %132, %134 : vector<1x256xf32>
    %c14 = arith.constant 14 : index
    %136 = memref.load %arg1[%c14] : memref<36xf32, #tpu.memory_space<smem>>
    %137 = vector.broadcast %136 : f32 to vector<1x256xf32>
    %138 = arith.mulf %135, %137 : vector<1x256xf32>
    %139 = arith.addf %131, %138 : vector<1x256xf32>
    %c241_i32_66 = arith.constant 241 : i32
    %140 = tpu.dynamic_rotate %96 by %c241_i32_66 dim 1 : vector<1x256xf32>, i32 -> vector<1x256xf32>
    %c6_67 = arith.constant 6 : index
    %c0_68 = arith.constant 0 : index
    %c0_69 = arith.constant 0 : index
    %141 = vector.load %arg3[%c6_67, %c0_68, %c0_69] : memref<9x1x256xf32, #tpu.memory_space<vmem>>, vector<1x1x256xf32>
    %142 = vector.shape_cast %141 : vector<1x1x256xf32> to vector<1x256xf32>
    %143 = arith.mulf %140, %142 : vector<1x256xf32>
    %c15 = arith.constant 15 : index
    %144 = memref.load %arg1[%c15] : memref<36xf32, #tpu.memory_space<smem>>
    %145 = vector.broadcast %144 : f32 to vector<1x256xf32>
    %146 = arith.mulf %143, %145 : vector<1x256xf32>
    %147 = arith.addf %139, %146 : vector<1x256xf32>
    %c240_i32_70 = arith.constant 240 : i32
    %148 = tpu.dynamic_rotate %96 by %c240_i32_70 dim 1 : vector<1x256xf32>, i32 -> vector<1x256xf32>
    %c7_71 = arith.constant 7 : index
    %c0_72 = arith.constant 0 : index
    %c0_73 = arith.constant 0 : index
    %149 = vector.load %arg3[%c7_71, %c0_72, %c0_73] : memref<9x1x256xf32, #tpu.memory_space<vmem>>, vector<1x1x256xf32>
    %150 = vector.shape_cast %149 : vector<1x1x256xf32> to vector<1x256xf32>
    %151 = arith.mulf %148, %150 : vector<1x256xf32>
    %c16 = arith.constant 16 : index
    %152 = memref.load %arg1[%c16] : memref<36xf32, #tpu.memory_space<smem>>
    %153 = vector.broadcast %152 : f32 to vector<1x256xf32>
    %154 = arith.mulf %151, %153 : vector<1x256xf32>
    %155 = arith.addf %147, %154 : vector<1x256xf32>
    %c239_i32_74 = arith.constant 239 : i32
    %156 = tpu.dynamic_rotate %96 by %c239_i32_74 dim 1 : vector<1x256xf32>, i32 -> vector<1x256xf32>
    %c8_75 = arith.constant 8 : index
    %c0_76 = arith.constant 0 : index
    %c0_77 = arith.constant 0 : index
    %157 = vector.load %arg3[%c8_75, %c0_76, %c0_77] : memref<9x1x256xf32, #tpu.memory_space<vmem>>, vector<1x1x256xf32>
    %158 = vector.shape_cast %157 : vector<1x1x256xf32> to vector<1x256xf32>
    %159 = arith.mulf %156, %158 : vector<1x256xf32>
    %c17 = arith.constant 17 : index
    %160 = memref.load %arg1[%c17] : memref<36xf32, #tpu.memory_space<smem>>
    %161 = vector.broadcast %160 : f32 to vector<1x256xf32>
    %162 = arith.mulf %159, %161 : vector<1x256xf32>
    %163 = arith.addf %155, %162 : vector<1x256xf32>
    %cst_78 = arith.constant 0.000000e+00 : f32
    %164 = vector.broadcast %cst_78 : f32 to vector<1x256xf32>
    %165 = arith.maximumf %163, %164 : vector<1x256xf32>
    %c1_79 = arith.constant 1 : index
    %166 = memref.load %arg2[%c1_79] : memref<16xf32, #tpu.memory_space<smem>>
    %167 = vector.broadcast %166 : f32 to vector<1x256xf32>
    %168 = arith.mulf %165, %167 : vector<1x256xf32>
    %169 = arith.addf %82, %168 : vector<1x256xf32>
    %c5_80 = arith.constant 5 : index
    %170 = memref.load %arg2[%c5_80] : memref<16xf32, #tpu.memory_space<smem>>
    %171 = vector.broadcast %170 : f32 to vector<1x256xf32>
    %172 = arith.mulf %165, %171 : vector<1x256xf32>
    %173 = arith.addf %86, %172 : vector<1x256xf32>
    %c9_81 = arith.constant 9 : index
    %174 = memref.load %arg2[%c9_81] : memref<16xf32, #tpu.memory_space<smem>>
    %175 = vector.broadcast %174 : f32 to vector<1x256xf32>
    %176 = arith.mulf %165, %175 : vector<1x256xf32>
    %177 = arith.addf %90, %176 : vector<1x256xf32>
    %c13_82 = arith.constant 13 : index
    %178 = memref.load %arg2[%c13_82] : memref<16xf32, #tpu.memory_space<smem>>
    %179 = vector.broadcast %178 : f32 to vector<1x256xf32>
    %180 = arith.mulf %165, %179 : vector<1x256xf32>
    %181 = arith.addf %94, %180 : vector<1x256xf32>
    %c0_83 = arith.constant 0 : index
    %c2_84 = arith.constant 2 : index
    %c0_85 = arith.constant 0 : index
    %182 = vector.load %arg4[%c0_83, %c2_84, %c0_85] : memref<1x4x256xf32, #tpu.memory_space<vmem>>, vector<1x1x256xf32>
    %183 = vector.shape_cast %182 : vector<1x1x256xf32> to vector<1x256xf32>
    %c22 = arith.constant 22 : index
    %184 = memref.load %arg1[%c22] : memref<36xf32, #tpu.memory_space<smem>>
    %185 = vector.broadcast %184 : f32 to vector<1x256xf32>
    %186 = arith.mulf %183, %185 : vector<1x256xf32>
    %c17_i32_86 = arith.constant 17 : i32
    %187 = tpu.dynamic_rotate %183 by %c17_i32_86 dim 1 : vector<1x256xf32>, i32 -> vector<1x256xf32>
    %c0_87 = arith.constant 0 : index
    %c0_88 = arith.constant 0 : index
    %c0_89 = arith.constant 0 : index
    %188 = vector.load %arg3[%c0_87, %c0_88, %c0_89] : memref<9x1x256xf32, #tpu.memory_space<vmem>>, vector<1x1x256xf32>
    %189 = vector.shape_cast %188 : vector<1x1x256xf32> to vector<1x256xf32>
    %190 = arith.mulf %187, %189 : vector<1x256xf32>
    %c18 = arith.constant 18 : index
    %191 = memref.load %arg1[%c18] : memref<36xf32, #tpu.memory_space<smem>>
    %192 = vector.broadcast %191 : f32 to vector<1x256xf32>
    %193 = arith.mulf %190, %192 : vector<1x256xf32>
    %194 = arith.addf %186, %193 : vector<1x256xf32>
    %c16_i32_90 = arith.constant 16 : i32
    %195 = tpu.dynamic_rotate %183 by %c16_i32_90 dim 1 : vector<1x256xf32>, i32 -> vector<1x256xf32>
    %c1_91 = arith.constant 1 : index
    %c0_92 = arith.constant 0 : index
    %c0_93 = arith.constant 0 : index
    %196 = vector.load %arg3[%c1_91, %c0_92, %c0_93] : memref<9x1x256xf32, #tpu.memory_space<vmem>>, vector<1x1x256xf32>
    %197 = vector.shape_cast %196 : vector<1x1x256xf32> to vector<1x256xf32>
    %198 = arith.mulf %195, %197 : vector<1x256xf32>
    %c19 = arith.constant 19 : index
    %199 = memref.load %arg1[%c19] : memref<36xf32, #tpu.memory_space<smem>>
    %200 = vector.broadcast %199 : f32 to vector<1x256xf32>
    %201 = arith.mulf %198, %200 : vector<1x256xf32>
    %202 = arith.addf %194, %201 : vector<1x256xf32>
    %c15_i32_94 = arith.constant 15 : i32
    %203 = tpu.dynamic_rotate %183 by %c15_i32_94 dim 1 : vector<1x256xf32>, i32 -> vector<1x256xf32>
    %c2_95 = arith.constant 2 : index
    %c0_96 = arith.constant 0 : index
    %c0_97 = arith.constant 0 : index
    %204 = vector.load %arg3[%c2_95, %c0_96, %c0_97] : memref<9x1x256xf32, #tpu.memory_space<vmem>>, vector<1x1x256xf32>
    %205 = vector.shape_cast %204 : vector<1x1x256xf32> to vector<1x256xf32>
    %206 = arith.mulf %203, %205 : vector<1x256xf32>
    %c20 = arith.constant 20 : index
    %207 = memref.load %arg1[%c20] : memref<36xf32, #tpu.memory_space<smem>>
    %208 = vector.broadcast %207 : f32 to vector<1x256xf32>
    %209 = arith.mulf %206, %208 : vector<1x256xf32>
    %210 = arith.addf %202, %209 : vector<1x256xf32>
    %c1_i32_98 = arith.constant 1 : i32
    %211 = tpu.dynamic_rotate %183 by %c1_i32_98 dim 1 : vector<1x256xf32>, i32 -> vector<1x256xf32>
    %c3_99 = arith.constant 3 : index
    %c0_100 = arith.constant 0 : index
    %c0_101 = arith.constant 0 : index
    %212 = vector.load %arg3[%c3_99, %c0_100, %c0_101] : memref<9x1x256xf32, #tpu.memory_space<vmem>>, vector<1x1x256xf32>
    %213 = vector.shape_cast %212 : vector<1x1x256xf32> to vector<1x256xf32>
    %214 = arith.mulf %211, %213 : vector<1x256xf32>
    %c21 = arith.constant 21 : index
    %215 = memref.load %arg1[%c21] : memref<36xf32, #tpu.memory_space<smem>>
    %216 = vector.broadcast %215 : f32 to vector<1x256xf32>
    %217 = arith.mulf %214, %216 : vector<1x256xf32>
    %218 = arith.addf %210, %217 : vector<1x256xf32>
    %c255_i32_102 = arith.constant 255 : i32
    %219 = tpu.dynamic_rotate %183 by %c255_i32_102 dim 1 : vector<1x256xf32>, i32 -> vector<1x256xf32>
    %c5_103 = arith.constant 5 : index
    %c0_104 = arith.constant 0 : index
    %c0_105 = arith.constant 0 : index
    %220 = vector.load %arg3[%c5_103, %c0_104, %c0_105] : memref<9x1x256xf32, #tpu.memory_space<vmem>>, vector<1x1x256xf32>
    %221 = vector.shape_cast %220 : vector<1x1x256xf32> to vector<1x256xf32>
    %222 = arith.mulf %219, %221 : vector<1x256xf32>
    %c23 = arith.constant 23 : index
    %223 = memref.load %arg1[%c23] : memref<36xf32, #tpu.memory_space<smem>>
    %224 = vector.broadcast %223 : f32 to vector<1x256xf32>
    %225 = arith.mulf %222, %224 : vector<1x256xf32>
    %226 = arith.addf %218, %225 : vector<1x256xf32>
    %c241_i32_106 = arith.constant 241 : i32
    %227 = tpu.dynamic_rotate %183 by %c241_i32_106 dim 1 : vector<1x256xf32>, i32 -> vector<1x256xf32>
    %c6_107 = arith.constant 6 : index
    %c0_108 = arith.constant 0 : index
    %c0_109 = arith.constant 0 : index
    %228 = vector.load %arg3[%c6_107, %c0_108, %c0_109] : memref<9x1x256xf32, #tpu.memory_space<vmem>>, vector<1x1x256xf32>
    %229 = vector.shape_cast %228 : vector<1x1x256xf32> to vector<1x256xf32>
    %230 = arith.mulf %227, %229 : vector<1x256xf32>
    %c24 = arith.constant 24 : index
    %231 = memref.load %arg1[%c24] : memref<36xf32, #tpu.memory_space<smem>>
    %232 = vector.broadcast %231 : f32 to vector<1x256xf32>
    %233 = arith.mulf %230, %232 : vector<1x256xf32>
    %234 = arith.addf %226, %233 : vector<1x256xf32>
    %c240_i32_110 = arith.constant 240 : i32
    %235 = tpu.dynamic_rotate %183 by %c240_i32_110 dim 1 : vector<1x256xf32>, i32 -> vector<1x256xf32>
    %c7_111 = arith.constant 7 : index
    %c0_112 = arith.constant 0 : index
    %c0_113 = arith.constant 0 : index
    %236 = vector.load %arg3[%c7_111, %c0_112, %c0_113] : memref<9x1x256xf32, #tpu.memory_space<vmem>>, vector<1x1x256xf32>
    %237 = vector.shape_cast %236 : vector<1x1x256xf32> to vector<1x256xf32>
    %238 = arith.mulf %235, %237 : vector<1x256xf32>
    %c25 = arith.constant 25 : index
    %239 = memref.load %arg1[%c25] : memref<36xf32, #tpu.memory_space<smem>>
    %240 = vector.broadcast %239 : f32 to vector<1x256xf32>
    %241 = arith.mulf %238, %240 : vector<1x256xf32>
    %242 = arith.addf %234, %241 : vector<1x256xf32>
    %c239_i32_114 = arith.constant 239 : i32
    %243 = tpu.dynamic_rotate %183 by %c239_i32_114 dim 1 : vector<1x256xf32>, i32 -> vector<1x256xf32>
    %c8_115 = arith.constant 8 : index
    %c0_116 = arith.constant 0 : index
    %c0_117 = arith.constant 0 : index
    %244 = vector.load %arg3[%c8_115, %c0_116, %c0_117] : memref<9x1x256xf32, #tpu.memory_space<vmem>>, vector<1x1x256xf32>
    %245 = vector.shape_cast %244 : vector<1x1x256xf32> to vector<1x256xf32>
    %246 = arith.mulf %243, %245 : vector<1x256xf32>
    %c26 = arith.constant 26 : index
    %247 = memref.load %arg1[%c26] : memref<36xf32, #tpu.memory_space<smem>>
    %248 = vector.broadcast %247 : f32 to vector<1x256xf32>
    %249 = arith.mulf %246, %248 : vector<1x256xf32>
    %250 = arith.addf %242, %249 : vector<1x256xf32>
    %cst_118 = arith.constant 0.000000e+00 : f32
    %251 = vector.broadcast %cst_118 : f32 to vector<1x256xf32>
    %252 = arith.maximumf %250, %251 : vector<1x256xf32>
    %c2_119 = arith.constant 2 : index
    %253 = memref.load %arg2[%c2_119] : memref<16xf32, #tpu.memory_space<smem>>
    %254 = vector.broadcast %253 : f32 to vector<1x256xf32>
    %255 = arith.mulf %252, %254 : vector<1x256xf32>
    %256 = arith.addf %169, %255 : vector<1x256xf32>
    %c6_120 = arith.constant 6 : index
    %257 = memref.load %arg2[%c6_120] : memref<16xf32, #tpu.memory_space<smem>>
    %258 = vector.broadcast %257 : f32 to vector<1x256xf32>
    %259 = arith.mulf %252, %258 : vector<1x256xf32>
    %260 = arith.addf %173, %259 : vector<1x256xf32>
    %c10_121 = arith.constant 10 : index
    %261 = memref.load %arg2[%c10_121] : memref<16xf32, #tpu.memory_space<smem>>
    %262 = vector.broadcast %261 : f32 to vector<1x256xf32>
    %263 = arith.mulf %252, %262 : vector<1x256xf32>
    %264 = arith.addf %177, %263 : vector<1x256xf32>
    %c14_122 = arith.constant 14 : index
    %265 = memref.load %arg2[%c14_122] : memref<16xf32, #tpu.memory_space<smem>>
    %266 = vector.broadcast %265 : f32 to vector<1x256xf32>
    %267 = arith.mulf %252, %266 : vector<1x256xf32>
    %268 = arith.addf %181, %267 : vector<1x256xf32>
    %c0_123 = arith.constant 0 : index
    %c3_124 = arith.constant 3 : index
    %c0_125 = arith.constant 0 : index
    %269 = vector.load %arg4[%c0_123, %c3_124, %c0_125] : memref<1x4x256xf32, #tpu.memory_space<vmem>>, vector<1x1x256xf32>
    %270 = vector.shape_cast %269 : vector<1x1x256xf32> to vector<1x256xf32>
    %c31 = arith.constant 31 : index
    %271 = memref.load %arg1[%c31] : memref<36xf32, #tpu.memory_space<smem>>
    %272 = vector.broadcast %271 : f32 to vector<1x256xf32>
    %273 = arith.mulf %270, %272 : vector<1x256xf32>
    %c17_i32_126 = arith.constant 17 : i32
    %274 = tpu.dynamic_rotate %270 by %c17_i32_126 dim 1 : vector<1x256xf32>, i32 -> vector<1x256xf32>
    %c0_127 = arith.constant 0 : index
    %c0_128 = arith.constant 0 : index
    %c0_129 = arith.constant 0 : index
    %275 = vector.load %arg3[%c0_127, %c0_128, %c0_129] : memref<9x1x256xf32, #tpu.memory_space<vmem>>, vector<1x1x256xf32>
    %276 = vector.shape_cast %275 : vector<1x1x256xf32> to vector<1x256xf32>
    %277 = arith.mulf %274, %276 : vector<1x256xf32>
    %c27 = arith.constant 27 : index
    %278 = memref.load %arg1[%c27] : memref<36xf32, #tpu.memory_space<smem>>
    %279 = vector.broadcast %278 : f32 to vector<1x256xf32>
    %280 = arith.mulf %277, %279 : vector<1x256xf32>
    %281 = arith.addf %273, %280 : vector<1x256xf32>
    %c16_i32_130 = arith.constant 16 : i32
    %282 = tpu.dynamic_rotate %270 by %c16_i32_130 dim 1 : vector<1x256xf32>, i32 -> vector<1x256xf32>
    %c1_131 = arith.constant 1 : index
    %c0_132 = arith.constant 0 : index
    %c0_133 = arith.constant 0 : index
    %283 = vector.load %arg3[%c1_131, %c0_132, %c0_133] : memref<9x1x256xf32, #tpu.memory_space<vmem>>, vector<1x1x256xf32>
    %284 = vector.shape_cast %283 : vector<1x1x256xf32> to vector<1x256xf32>
    %285 = arith.mulf %282, %284 : vector<1x256xf32>
    %c28 = arith.constant 28 : index
    %286 = memref.load %arg1[%c28] : memref<36xf32, #tpu.memory_space<smem>>
    %287 = vector.broadcast %286 : f32 to vector<1x256xf32>
    %288 = arith.mulf %285, %287 : vector<1x256xf32>
    %289 = arith.addf %281, %288 : vector<1x256xf32>
    %c15_i32_134 = arith.constant 15 : i32
    %290 = tpu.dynamic_rotate %270 by %c15_i32_134 dim 1 : vector<1x256xf32>, i32 -> vector<1x256xf32>
    %c2_135 = arith.constant 2 : index
    %c0_136 = arith.constant 0 : index
    %c0_137 = arith.constant 0 : index
    %291 = vector.load %arg3[%c2_135, %c0_136, %c0_137] : memref<9x1x256xf32, #tpu.memory_space<vmem>>, vector<1x1x256xf32>
    %292 = vector.shape_cast %291 : vector<1x1x256xf32> to vector<1x256xf32>
    %293 = arith.mulf %290, %292 : vector<1x256xf32>
    %c29 = arith.constant 29 : index
    %294 = memref.load %arg1[%c29] : memref<36xf32, #tpu.memory_space<smem>>
    %295 = vector.broadcast %294 : f32 to vector<1x256xf32>
    %296 = arith.mulf %293, %295 : vector<1x256xf32>
    %297 = arith.addf %289, %296 : vector<1x256xf32>
    %c1_i32_138 = arith.constant 1 : i32
    %298 = tpu.dynamic_rotate %270 by %c1_i32_138 dim 1 : vector<1x256xf32>, i32 -> vector<1x256xf32>
    %c3_139 = arith.constant 3 : index
    %c0_140 = arith.constant 0 : index
    %c0_141 = arith.constant 0 : index
    %299 = vector.load %arg3[%c3_139, %c0_140, %c0_141] : memref<9x1x256xf32, #tpu.memory_space<vmem>>, vector<1x1x256xf32>
    %300 = vector.shape_cast %299 : vector<1x1x256xf32> to vector<1x256xf32>
    %301 = arith.mulf %298, %300 : vector<1x256xf32>
    %c30 = arith.constant 30 : index
    %302 = memref.load %arg1[%c30] : memref<36xf32, #tpu.memory_space<smem>>
    %303 = vector.broadcast %302 : f32 to vector<1x256xf32>
    %304 = arith.mulf %301, %303 : vector<1x256xf32>
    %305 = arith.addf %297, %304 : vector<1x256xf32>
    %c255_i32_142 = arith.constant 255 : i32
    %306 = tpu.dynamic_rotate %270 by %c255_i32_142 dim 1 : vector<1x256xf32>, i32 -> vector<1x256xf32>
    %c5_143 = arith.constant 5 : index
    %c0_144 = arith.constant 0 : index
    %c0_145 = arith.constant 0 : index
    %307 = vector.load %arg3[%c5_143, %c0_144, %c0_145] : memref<9x1x256xf32, #tpu.memory_space<vmem>>, vector<1x1x256xf32>
    %308 = vector.shape_cast %307 : vector<1x1x256xf32> to vector<1x256xf32>
    %309 = arith.mulf %306, %308 : vector<1x256xf32>
    %c32 = arith.constant 32 : index
    %310 = memref.load %arg1[%c32] : memref<36xf32, #tpu.memory_space<smem>>
    %311 = vector.broadcast %310 : f32 to vector<1x256xf32>
    %312 = arith.mulf %309, %311 : vector<1x256xf32>
    %313 = arith.addf %305, %312 : vector<1x256xf32>
    %c241_i32_146 = arith.constant 241 : i32
    %314 = tpu.dynamic_rotate %270 by %c241_i32_146 dim 1 : vector<1x256xf32>, i32 -> vector<1x256xf32>
    %c6_147 = arith.constant 6 : index
    %c0_148 = arith.constant 0 : index
    %c0_149 = arith.constant 0 : index
    %315 = vector.load %arg3[%c6_147, %c0_148, %c0_149] : memref<9x1x256xf32, #tpu.memory_space<vmem>>, vector<1x1x256xf32>
    %316 = vector.shape_cast %315 : vector<1x1x256xf32> to vector<1x256xf32>
    %317 = arith.mulf %314, %316 : vector<1x256xf32>
    %c33 = arith.constant 33 : index
    %318 = memref.load %arg1[%c33] : memref<36xf32, #tpu.memory_space<smem>>
    %319 = vector.broadcast %318 : f32 to vector<1x256xf32>
    %320 = arith.mulf %317, %319 : vector<1x256xf32>
    %321 = arith.addf %313, %320 : vector<1x256xf32>
    %c240_i32_150 = arith.constant 240 : i32
    %322 = tpu.dynamic_rotate %270 by %c240_i32_150 dim 1 : vector<1x256xf32>, i32 -> vector<1x256xf32>
    %c7_151 = arith.constant 7 : index
    %c0_152 = arith.constant 0 : index
    %c0_153 = arith.constant 0 : index
    %323 = vector.load %arg3[%c7_151, %c0_152, %c0_153] : memref<9x1x256xf32, #tpu.memory_space<vmem>>, vector<1x1x256xf32>
    %324 = vector.shape_cast %323 : vector<1x1x256xf32> to vector<1x256xf32>
    %325 = arith.mulf %322, %324 : vector<1x256xf32>
    %c34 = arith.constant 34 : index
    %326 = memref.load %arg1[%c34] : memref<36xf32, #tpu.memory_space<smem>>
    %327 = vector.broadcast %326 : f32 to vector<1x256xf32>
    %328 = arith.mulf %325, %327 : vector<1x256xf32>
    %329 = arith.addf %321, %328 : vector<1x256xf32>
    %c239_i32_154 = arith.constant 239 : i32
    %330 = tpu.dynamic_rotate %270 by %c239_i32_154 dim 1 : vector<1x256xf32>, i32 -> vector<1x256xf32>
    %c8_155 = arith.constant 8 : index
    %c0_156 = arith.constant 0 : index
    %c0_157 = arith.constant 0 : index
    %331 = vector.load %arg3[%c8_155, %c0_156, %c0_157] : memref<9x1x256xf32, #tpu.memory_space<vmem>>, vector<1x1x256xf32>
    %332 = vector.shape_cast %331 : vector<1x1x256xf32> to vector<1x256xf32>
    %333 = arith.mulf %330, %332 : vector<1x256xf32>
    %c35 = arith.constant 35 : index
    %334 = memref.load %arg1[%c35] : memref<36xf32, #tpu.memory_space<smem>>
    %335 = vector.broadcast %334 : f32 to vector<1x256xf32>
    %336 = arith.mulf %333, %335 : vector<1x256xf32>
    %337 = arith.addf %329, %336 : vector<1x256xf32>
    %cst_158 = arith.constant 0.000000e+00 : f32
    %338 = vector.broadcast %cst_158 : f32 to vector<1x256xf32>
    %339 = arith.maximumf %337, %338 : vector<1x256xf32>
    %c3_159 = arith.constant 3 : index
    %340 = memref.load %arg2[%c3_159] : memref<16xf32, #tpu.memory_space<smem>>
    %341 = vector.broadcast %340 : f32 to vector<1x256xf32>
    %342 = arith.mulf %339, %341 : vector<1x256xf32>
    %343 = arith.addf %256, %342 : vector<1x256xf32>
    %c7_160 = arith.constant 7 : index
    %344 = memref.load %arg2[%c7_160] : memref<16xf32, #tpu.memory_space<smem>>
    %345 = vector.broadcast %344 : f32 to vector<1x256xf32>
    %346 = arith.mulf %339, %345 : vector<1x256xf32>
    %347 = arith.addf %260, %346 : vector<1x256xf32>
    %c11_161 = arith.constant 11 : index
    %348 = memref.load %arg2[%c11_161] : memref<16xf32, #tpu.memory_space<smem>>
    %349 = vector.broadcast %348 : f32 to vector<1x256xf32>
    %350 = arith.mulf %339, %349 : vector<1x256xf32>
    %351 = arith.addf %264, %350 : vector<1x256xf32>
    %c15_162 = arith.constant 15 : index
    %352 = memref.load %arg2[%c15_162] : memref<16xf32, #tpu.memory_space<smem>>
    %353 = vector.broadcast %352 : f32 to vector<1x256xf32>
    %354 = arith.mulf %339, %353 : vector<1x256xf32>
    %355 = arith.addf %268, %354 : vector<1x256xf32>
    %c0_163 = arith.constant 0 : index
    %c0_164 = arith.constant 0 : index
    %c0_165 = arith.constant 0 : index
    %356 = vector.load %arg5[%c0_163, %c0_164, %c0_165] : memref<1x4x256xf32, #tpu.memory_space<vmem>>, vector<1x1x256xf32>
    %357 = vector.shape_cast %356 : vector<1x1x256xf32> to vector<1x256xf32>
    %358 = vector.shape_cast %343 : vector<1x256xf32> to vector<1x1x256xf32>
    tpu.vector_store %arg5[%c0_163, %c0_164, %c0_165], %358 {strides = array<i32>} : memref<1x4x256xf32, #tpu.memory_space<vmem>>, vector<1x1x256xf32>,
    %c0_166 = arith.constant 0 : index
    %c1_167 = arith.constant 1 : index
    %c0_168 = arith.constant 0 : index
    %359 = vector.load %arg5[%c0_166, %c1_167, %c0_168] : memref<1x4x256xf32, #tpu.memory_space<vmem>>, vector<1x1x256xf32>
    %360 = vector.shape_cast %359 : vector<1x1x256xf32> to vector<1x256xf32>
    %361 = vector.shape_cast %347 : vector<1x256xf32> to vector<1x1x256xf32>
    tpu.vector_store %arg5[%c0_166, %c1_167, %c0_168], %361 {strides = array<i32>} : memref<1x4x256xf32, #tpu.memory_space<vmem>>, vector<1x1x256xf32>,
    %c0_169 = arith.constant 0 : index
    %c2_170 = arith.constant 2 : index
    %c0_171 = arith.constant 0 : index
    %362 = vector.load %arg5[%c0_169, %c2_170, %c0_171] : memref<1x4x256xf32, #tpu.memory_space<vmem>>, vector<1x1x256xf32>
    %363 = vector.shape_cast %362 : vector<1x1x256xf32> to vector<1x256xf32>
    %364 = vector.shape_cast %351 : vector<1x256xf32> to vector<1x1x256xf32>
    tpu.vector_store %arg5[%c0_169, %c2_170, %c0_171], %364 {strides = array<i32>} : memref<1x4x256xf32, #tpu.memory_space<vmem>>, vector<1x1x256xf32>,
    %c0_172 = arith.constant 0 : index
    %c3_173 = arith.constant 3 : index
    %c0_174 = arith.constant 0 : index
    %365 = vector.load %arg5[%c0_172, %c3_173, %c0_174] : memref<1x4x256xf32, #tpu.memory_space<vmem>>, vector<1x1x256xf32>
    %366 = vector.shape_cast %365 : vector<1x1x256xf32> to vector<1x256xf32>
    %367 = vector.shape_cast %355 : vector<1x256xf32> to vector<1x1x256xf32>
    tpu.vector_store %arg5[%c0_172, %c3_173, %c0_174], %367 {strides = array<i32>} : memref<1x4x256xf32, #tpu.memory_space<vmem>>, vector<1x1x256xf32>,
    return
  }
  func.func @transform_0(%arg0: i32) -> i32 {
    %c0_i32 = arith.constant 0 : i32
    %c0_i32_0 = arith.constant 0 : i32
    return %c0_i32 : i32
  }
  func.func @transform_1(%arg0: i32) -> i32 {
    %c0_i32 = arith.constant 0 : i32
    %c0_i32_0 = arith.constant 0 : i32
    return %c0_i32 : i32
  }
  func.func @transform_2(%arg0: i32) -> (i32, i32, i32) {
    %c0_i32 = arith.constant 0 : i32
    %c0_i32_0 = arith.constant 0 : i32
    %c0_i32_1 = arith.constant 0 : i32
    %c0_i32_2 = arith.constant 0 : i32
    return %c0_i32, %c0_i32_0, %c0_i32_1 : i32, i32, i32
  }
  func.func @transform_3(%arg0: i32) -> (i32, i32, i32) {
    %c0_i32 = arith.constant 0 : i32
    %c0_i32_0 = arith.constant 0 : i32
    %c0_i32_1 = arith.constant 0 : i32
    return %arg0, %c0_i32, %c0_i32_0 : i32, i32, i32
  }
  func.func @transform_4(%arg0: i32) -> (i32, i32, i32) {
    %c0_i32 = arith.constant 0 : i32
    %c0_i32_0 = arith.constant 0 : i32
    %c0_i32_1 = arith.constant 0 : i32
    return %arg0, %c0_i32, %c0_i32_0 : i32, i32, i32
  }
}

</mosaic_0001>

<bundles_post_ra>
// kernel: pdc_block_forward.1
= control target key start
LH: loop header
LB: loop body
LE: loop exit
PB: predicated region body
PF: predicated region fallthrough
CT: control target
= control target key end

     0   :  { %9 = vsyncpa [#allocation3], 0  ;;  %s2443_s0 = inlined_call_operand.vmem [shape: f32[36], index: 0, kind: input, shape index: {}]   ;;  %s2444_s1 = inlined_call_operand.vmem [shape: f32[16], index: 1, kind: input, shape index: {}]   ;;  %s2445_s2 = inlined_call_operand.vmem [shape: f32[9,1,256], index: 2, kind: input, shape index: {}]   ;;  %s2446_s3 = inlined_call_operand.vmem [shape: f32[2,4,256], index: 3, kind: input, shape index: {}]   ;;  %s2447_s4 = inlined_call_operand.vmem [shape: f32[2,4,256], index: 4, kind: output, shape index: {}]  }
   0x1   :  { %10 = vsyncpa [#allocation5], 0  ;;  %s1753_s15 = smov 0  }
   0x2 LB: > { %s1759_s16 = sadd.s32 4294967295, %s1715_s15   ;;  %p1551_p0 = scmp.ge.s32.totalorder %s1715_s15, 1  ;;  %s1715_s15 = sphi %s1753_s15, %s16_s15  }
   0x3   : > { %p136_p1 = scmp.lt.s32.totalorder %s1715_s15, 3  ;;  %s149_s19 = sshll.u32 %s2443_s0, 4  ;;  %s150_s19 = int_to_ptr.vmem [resolvable:$true] %s149_s19 }
   0x4   : > { %p2448_p3 = scmp.eq.s32.totalorder %s1759_s16, 0  ;;  %s160_s23 = sshll.u32 %s2444_s1, 4  ;;  %s161_s23 = int_to_ptr.vmem [resolvable:$true] %s160_s23 }
   0x5   : > { %p1766_p2 = pnand %p1551_p0, %p136_p1  ;;  %s1671_s25 = scalar_lea.vmem %s150_s19, 16 }
   0x6   : > { %p1672_p6 = scmp.ne.s32.totalorder %s150_s19, %s1671_s25  ;;  %p1679_p10 = scmp.lt.s32.totalorder %s150_s19, %s150_s19 }
   0x7   : > { %s2450_s20 = scalar_select %p1766_p2, 1, 0 }
   0x8   : > { %p1637_p4 = pneg %p1766_p2  ;;  %p1680_p11 = scmp.lt.s32.totalorder %s1671_s25, %s1671_s25 }
   0xa   : > { %p1778_p5 = pnand %p2448_p3, %p1637_p4  ;;  %p1681_p12 = por %p1680_p11, %p1679_p10 }
   0xc   : > { %p1673_p7 = pneg %p1778_p5 }
   0xe   : > { %p1674_p8 = pnand %p1673_p7, %p1672_p6 }
  0x10   : > { %p1675_p9 = pneg %p1674_p8 }
  0x12   : > { %p1682_p13 = pnand %p1681_p12, %p1675_p9 }
  0x14   : > { %1685 = shalt.err (!%p1682_p13)
}
  0x15   : > { %s1717_s26 = smov [#allocation2]   ;;  %s1686_s27 = scalar_lea.vmem %s161_s23, 16 }
  0x16   : > { %1640 = dma.vmem_to_smem (!%p1778_p5), %s150_s19, 16, %s1717_s26, [#allocation3]  }
  0x17   : > { %p1687_p0 = scmp.ne.s32.totalorder %s161_s23, %s1686_s27  ;;  %p1694_p3 = scmp.lt.s32.totalorder %s161_s23, %s161_s23 }
  0x18   : > { %p1695_p2 = scmp.lt.s32.totalorder %s1686_s27, %s1686_s27 }
  0x19   : > { %p1689_p1 = pnand %p1687_p0, %p1673_p7 }
  0x1a   : > { %p1696_p6 = por %p1695_p2, %p1694_p3 }
  0x1b   : > { %p1690_p4 = pneg %p1689_p1 }
  0x1d   : > { %p1697_p8 = pnand %p1696_p6, %p1690_p4 }
  0x1f   : > { %1700 = shalt.err (!%p1697_p8)
}
  0x20   : > { %s1718_s28 = smov [#allocation4]   ;;  %p2452_p9 = scmp.ne.s32.totalorder %s2450_s20, 0 }
  0x21   : > { %1643 = dma.vmem_to_smem (!%p1778_p5), %s161_s23, 16, %s1718_s28, [#allocation5]  }
  0x22   : > { %184 = sbr.rel (%p2452_p9) target bundleno = 318 (0x13e), region = 36  ;;  %p2453_p10 = scmp.eq.s32.totalorder (!%p2452_p9), %s1759_s16, 0 }
  0x29   : > { %1706 = dma.done.wait (%p2453_p10), [#allocation3], 16   ;;  %p2454_p11 = pmov %p2453_p10 }
  0x2a   : > { %p2455_p7 = pmov %p2453_p10 }
  0x2b   : > { %1708 = vsyncadd (%p2454_p11), [#allocation3], 4294967280 }
  0x2c   : > { %1710 = dma.done.wait (%p2455_p7), [#allocation5], 16   ;;  %p2456_p2 = pmov %p2455_p7 }
  0x2e   : > { %1712 = vsyncadd (%p2456_p2), [#allocation5], 4294967280 }
  0x2f   : > { %194 = sfence }
  0x30   : > { %p215_p3 = scmp.lt.s32.totalorder %s1759_s16, 1  ;;  %v236_v0 = vlaneseq  ;;  %s1719_s7 = smov 16   ;;  %v1566_v17 = vld [vmem:[%s2445_s2 + $0x2] sm:$0x3]  ;;  %v1727_v18 = vmov 1966171168  }
  0x31   : > { %s1720_s8 = smov 17   ;;  %s1721_s9 = smov 15   ;;  %v277_v19 = vunpack.c.l.s4 %v1727_v18  ;;  %v255_v20 = vld [vmem:[%s2445_s2] sm:$0x3]  ;;  %v1568_v24 = vld [vmem:[%s2445_s2 + $0x4] sm:$0x3] }
  0x32   : > { %s2458_s16 = smov (!%p215_p3, %s1759_s16), 1  ;;  %v1803_v1 = vshrl.u32 %v236_v0, 7  ;;  %s1722_s10 = smov 1   ;;  %v1922_v16 = vand.u32 127, %v236_v0  ;;  %v1570_v43 = vld [vmem:[%s2445_s2 + $0x6] sm:$0x3] }
  0x33   : > { %s1627_s29 = sshll.u32 %s2458_s16, 3  ;;  %s1723_s11 = smov 127   ;;  %v278_v28 = vunpack.c.0.s8 %v277_v19  ;;  %v1572_v52 = vld [vmem:[%s2445_s2 + $0xa] sm:$0x3]  ;;  %vm1463_vm8 = vcmp.lt.s32.totalorder %v236_v0, 256 }
  0x34   : > { %v1807_v2 = vsub.s32 0, %v1803_v1  ;;  %s1814_s6 = scalar_lea.vmem %s2446_s3, %s1627_s29  ;;  %v1817_v3 = vsub.s32 1, %v1803_v1  ;;  %s1724_s12 = smov 113   ;;  %vm296_vm0 = vcmp.lt.s32.totalorder %v1922_v16, 16  ;;  %vm252_vm1 = vcmp.lt.s32.totalorder %v1922_v16, 17 }
  0x35   : > { %v1820_v4 = vld [vmem:[%s1814_s6] ss:$4 sm:$0x3]  ;;  %s1725_s13 = smov 112   ;;  %s1726_s14 = smov 111   ;;  %vm341_vm2 = vcmp.lt.s32.totalorder %v1922_v16, 15  ;;  %v1986_v44 = vsub.s32 %v278_v28, %v1803_v1 }
  0x36   : > { %v239_v5 = vrot.slane %v1820_v4, %v1807_v2  ;;  %v243_v6 = vrot.slane %v1820_v4, %v1817_v3  ;;  %v1841_v7 = vld [vmem:[%s1814_s6 + $0x1] ss:$4 sm:$0x3]  ;;  %v1852_v10 = vld [vmem:[%s1814_s6 + $0x2] ss:$4 sm:$0x3]  ;;  %v1938_v23 = vrot.slane %v1566_v17, %v1807_v2  ;;  %v1948_v25 = vrot.slane %v1566_v17, %v1817_v3 }
  0x37   : > { %v635_v8 = vrot.slane %v1841_v7, %v1817_v3  ;;  %v631_v9 = vrot.slane %v1841_v7, %v1807_v2  ;;  %v914_v11 = vrot.slane %v1852_v10, %v1817_v3  ;;  %v910_v12 = vrot.slane %v1852_v10, %v1807_v2  ;;  %v1865_v13 = vld [vmem:[%s1814_s6 + $0x3] ss:$4 sm:$0x3]  ;;  %s1917_s17 = sld [smem:[#allocation2 + $0x1]]  ;;  %s1919_s18 = sld [smem:[#allocation2]] }
  0x38   : > { %292 = vrot.lane.b32.xlu1 %v239_v5, %s1719_s7  ;;  %246 = vrot.lane.b32.xlu0 %v239_v5, %s1720_s8  ;;  %v1871_v14 = vrot.slane %v1865_v13, %v1817_v3  ;;  %v1875_v15 = vrot.slane %v1865_v13, %v1807_v2  ;;  %s1931_s21 = sld [smem:[#allocation2 + $0x4]]  ;;  %s1943_s26 = sld [smem:[#allocation2 + $0x2]]  ;;  %v1952_v26 = vrot.slane %v255_v20, %v1807_v2  ;;  %vm386_vm3 = vcmp.lt.s32.totalorder %v1922_v16, 1  ;;  %v1574_v17 = vld [vmem:[%s2445_s2 + $0xc] sm:$0x3] }
  0x39   : > { %v1955_v27 = vrot.slane %v255_v20, %v1817_v3  ;;  %v1961_v33 = vrot.slane %v1568_v24, %v1807_v2  ;;  %v1964_v34 = vrot.slane %v1568_v24, %v1817_v3  ;;  %s1974_s27 = sld [smem:[#allocation2 + $0x3]]  ;;  %s1992_s5 = sld [smem:[#allocation2 + $0x5]]  ;;  %v2003_v56 = vrot.slane %v1570_v43, %v1807_v2 }
  0x3a   : > { %v2013_v62 = vrot.slane %v1570_v43, %v1817_v3  ;;  %vm431_vm4 = vcmp.lt.s32.totalorder %v1922_v16, 127  ;;  %v2017_v63 = vrot.slane %v1572_v52, %v1807_v2  ;;  %vm476_vm5 = vcmp.lt.s32.totalorder %v1922_v16, 113  ;;  %s2072_s19 = sld [smem:[#allocation2 + $0x8]]  ;;  %s2093_s20 = sld [smem:[#allocation2 + $0x9]] }
  0x3b   : > { %vm521_vm6 = vcmp.lt.s32.totalorder %v1922_v16, 112  ;;  %vm566_vm7 = vcmp.lt.s32.totalorder %v1922_v16, 111  ;;  %s2109_s22 = sld [smem:[#allocation2 + $0xd]]  ;;  %s2117_s23 = sld [smem:[#allocation2 + $0x12]] }
  0x3c   : > { %294 = vrot.lane.b32.xlu1 %v243_v6, %s1719_s7  ;;  %248 = vrot.lane.b32.xlu0 %v243_v6, %s1720_s8  ;;  %s2131_s24 = sld [smem:[#allocation2 + $0xb]]  ;;  %s2137_s25 = sld [smem:[#allocation2 + $0x16]] }
  0x3d   : > { %v315_v29 = vstv %s1917_s17  ;;  %v270_v31 = vstv %s1919_s18  ;;  %s2168_s28 = sld [smem:[#allocation2 + $0xc]]  ;;  %s2283_s17 = sld [smem:[#allocation2 + $0x18]] }
  0x3e   : > { %v233_v45 = vstv %s1931_s21  ;;  %v360_v53 = vstv %s1943_s26  ;;  %s2104_s21 = sld [smem:[#allocation2 + $0xa]]  ;;  %s2139_s26 = sld [smem:[#allocation2 + $0x13]] }
  0x3f   : > { %v234_v61 = vmul.f32 %v233_v45, %v1820_v4  ;;  %v450_v24 = vstv %s1992_s5  ;;  %v1576_v45 = vld [vmem:[%s2445_s2 + $0xe] sm:$0x3]  ;;  %s2179_s30 = sld [smem:[#allocation2 + $0x14]]  ;;  %s2186_s5 = sld [smem:[#allocation2 + $0x1f]] }
  0x40   : > { %339 = vrot.lane.b32.xlu1 %v243_v6, %s1721_s9  ;;  %337 = vrot.lane.b32.xlu0 %v239_v5, %s1721_s9  ;;  %s2294_s18 = sld [smem:[#allocation2 + $0x20]] }
  0x44   : > { %384 = vrot.lane.b32.xlu1 %v243_v6, %s1722_s10  ;;  %382 = vrot.lane.b32.xlu0 %v239_v5, %s1722_s10 }
  0x48   : > { %429 = vrot.lane.b32.xlu1 %v243_v6, %s1723_s11  ;;  %427 = vrot.lane.b32.xlu0 %v239_v5, %s1723_s11 }
  0x4c   : > { %474 = vrot.lane.b32.xlu1 %v243_v6, %s1724_s12  ;;  %472 = vrot.lane.b32.xlu0 %v239_v5, %s1724_s12 }
  0x50   : > { %519 = vrot.lane.b32.xlu1 %v243_v6, %s1725_s13  ;;  %517 = vrot.lane.b32.xlu0 %v239_v5, %s1725_s13 }
  0x54   : > { %564 = vrot.lane.b32.xlu1 %v243_v6, %s1726_s14  ;;  %562 = vrot.lane.b32.xlu0 %v239_v5, %s1726_s14 }
  0x58   : > { %640 = vrot.lane.b32.xlu1 %v635_v8, %s1720_s8  ;;  %638 = vrot.lane.b32.xlu0 %v631_v9, %s1720_s8 }
  0x5c   : > { %671 = vrot.lane.b32.xlu1 %v635_v8, %s1719_s7  ;;  %669 = vrot.lane.b32.xlu0 %v631_v9, %s1719_s7 }
  0x60   : > { %919 = vrot.lane.b32.xlu1 %v914_v11, %s1720_s8  ;;  %917 = vrot.lane.b32.xlu0 %v910_v12, %s1720_s8 }
  0x64   : > { %702 = vrot.lane.b32.xlu1 %v635_v8, %s1721_s9  ;;  %700 = vrot.lane.b32.xlu0 %v631_v9, %s1721_s9 }
  0x68   : > { %950 = vrot.lane.b32.xlu1 %v914_v11, %s1719_s7  ;;  %948 = vrot.lane.b32.xlu0 %v910_v12, %s1719_s7 }
  0x6c   : > { %1198 = vrot.lane.b32.xlu1 %v1871_v14, %s1720_s8  ;;  %1196 = vrot.lane.b32.xlu0 %v1875_v15, %s1720_s8  ;;  %s2204_s8 = sld [smem:[#allocation2 + $0xe]] }
  0x70   : > { %733 = vrot.lane.b32.xlu1 %v635_v8, %s1722_s10  ;;  %731 = vrot.lane.b32.xlu0 %v631_v9, %s1722_s10 }
  0x74   : > { %981 = vrot.lane.b32.xlu1 %v914_v11, %s1721_s9  ;;  %979 = vrot.lane.b32.xlu0 %v910_v12, %s1721_s9 }
  0x78   : > { %1229 = vrot.lane.b32.xlu1 %v1871_v14, %s1719_s7  ;;  %1227 = vrot.lane.b32.xlu0 %v1875_v15, %s1719_s7  ;;  %s2193_s7 = sld [smem:[#allocation2 + $0x1c]] }
  0x7c   : > { %764 = vrot.lane.b32.xlu1 %v635_v8, %s1723_s11  ;;  %762 = vrot.lane.b32.xlu0 %v631_v9, %s1723_s11 }
  0x80   : > { %1012 = vrot.lane.b32.xlu1 %v914_v11, %s1722_s10  ;;  %1010 = vrot.lane.b32.xlu0 %v910_v12, %s1722_s10 }
  0x84   : > { %1260 = vrot.lane.b32.xlu1 %v1871_v14, %s1721_s9  ;;  %1258 = vrot.lane.b32.xlu0 %v1875_v15, %s1721_s9  ;;  %s2019_s9 = sld [smem:[#allocation2 + $0x6]] }
  0x88   : > { %795 = vrot.lane.b32.xlu1 %v635_v8, %s1724_s12  ;;  %793 = vrot.lane.b32.xlu0 %v631_v9, %s1724_s12 }
  0x8c   : > { %1043 = vrot.lane.b32.xlu1 %v914_v11, %s1723_s11  ;;  %1041 = vrot.lane.b32.xlu0 %v910_v12, %s1723_s11 }
  0x90   : > { %1291 = vrot.lane.b32.xlu1 %v1871_v14, %s1722_s10  ;;  %1289 = vrot.lane.b32.xlu0 %v1875_v15, %s1722_s10  ;;  %s2228_s10 = sld [smem:[#allocation2 + $0x1d]] }
  0x94   : > { %826 = vrot.lane.b32.xlu1 %v635_v8, %s1725_s13  ;;  %824 = vrot.lane.b32.xlu0 %v631_v9, %s1725_s13 }
  0x98   : > { %1074 = vrot.lane.b32.xlu1 %v914_v11, %s1724_s12  ;;  %1072 = vrot.lane.b32.xlu0 %v910_v12, %s1724_s12 }
  0x9c   : > { %1322 = vrot.lane.b32.xlu1 %v1871_v14, %s1723_s11  ;;  %1320 = vrot.lane.b32.xlu0 %v1875_v15, %s1723_s11  ;;  %s2239_s11 = sld [smem:[#allocation2 + $0xf]] }
  0xa0   : > { %857 = vrot.lane.b32.xlu1 %v635_v8, %s1726_s14  ;;  %855 = vrot.lane.b32.xlu0 %v631_v9, %s1726_s14 }
  0xa4   : > { %1105 = vrot.lane.b32.xlu1 %v914_v11, %s1725_s13  ;;  %1103 = vrot.lane.b32.xlu0 %v910_v12, %s1725_s13 }
  0xa8   : > { %1353 = vrot.lane.b32.xlu1 %v1871_v14, %s1724_s12  ;;  %1351 = vrot.lane.b32.xlu0 %v1875_v15, %s1724_s12  ;;  %s2040_s12 = sld [smem:[#allocation2 + $0x7]] }
  0xaa   : > { %v293_v21 = vpop.permute.xlu1 %292  ;;  %v247_v22 = vpop.permute.xlu0 %246 }
  0xac   : > { %1136 = vrot.lane.b32.xlu1 %v914_v11, %s1726_s14  ;;  %1134 = vrot.lane.b32.xlu0 %v910_v12, %s1726_s14  ;;  %v405_v11 = vstv %s1974_s27  ;;  %s2151_s27 = sld [smem:[#allocation2 + $0x1b]] }
  0xae   : > { %v295_v30 = vpop.permute.xlu1 %294  ;;  %v249_v32 = vpop.permute.xlu0 %248 }
  0xaf   : > { %v297_v35 = vsel %vm296_vm0, %v293_v21, %v295_v30  ;;  %v298_v36 = vsel %vm296_vm0, %v295_v30, %v293_v21  ;;  %v253_v37 = vsel %vm252_vm1, %v247_v22, %v249_v32  ;;  %v254_v38 = vsel %vm252_vm1, %v249_v32, %v247_v22 }
  0xb0   : > { %v312_v39 = vmul.f32 %v1938_v23, %v298_v36  ;;  %v313_v40 = vmul.f32 %v1948_v25, %v297_v35  ;;  %v267_v41 = vmul.f32 %v1952_v26, %v254_v38  ;;  %v268_v42 = vmul.f32 %v1955_v27, %v253_v37  ;;  %1384 = vrot.lane.b32.xlu1 %v1871_v14, %s1725_s13 }
  0xb1   : > { %1382 = vrot.lane.b32.xlu0 %v1875_v15, %s1725_s13  ;;  %v2044_v35 = vrot.slane %v1574_v17, %v1807_v2  ;;  %s2261_s13 = sld [smem:[#allocation2 + $0x1e]] }
  0xb2   : > { %v316_v46 = vmul.f32 %v315_v29, %v312_v39  ;;  %v317_v47 = vmul.f32 %v315_v29, %v313_v40  ;;  %v271_v48 = vmul.f32 %v270_v31, %v267_v41  ;;  %v272_v49 = vmul.f32 %v270_v31, %v268_v42  ;;  %v340_v50 = vpop.permute.xlu1 %339  ;;  %v338_v51 = vpop.permute.xlu0 %337 }
  0xb3   : > { %v342_v54 = vsel %vm341_vm2, %v338_v51, %v340_v50  ;;  %v343_v55 = vsel %vm341_vm2, %v340_v50, %v338_v51  ;;  %v2051_v39 = vrot.slane %v1574_v17, %v1817_v3 }
  0xb4   : > { %v320_v57 = vcombine.low %v316_v46, %v317_v47  ;;  %v275_v58 = vcombine.low %v271_v48, %v272_v49  ;;  %v357_v59 = vmul.f32 %v1961_v33, %v343_v55  ;;  %v358_v60 = vmul.f32 %v1964_v34, %v342_v54  ;;  %1415 = vrot.lane.b32.xlu1 %v1871_v14, %s1726_s14 }
  0xb5   : > { %1413 = vrot.lane.b32.xlu0 %v1875_v15, %s1726_s14  ;;  %v2029_v15 = vrot.slane %v1572_v52, %v1817_v3  ;;  %v495_v47 = vstv %s2019_s9  ;;  %s2216_s9 = sld [smem:[#allocation2 + $0x15]]  ;;  %s2272_s14 = sld [smem:[#allocation2 + $0x10]] }
  0xb6   : > { %v327_v1 = vrot.slane %v320_v57, %v1986_v44  ;;  %v282_v5 = vrot.slane %v275_v58, %v1986_v44  ;;  %v361_v6 = vmul.f32 %v360_v53, %v357_v59  ;;  %v362_v4 = vmul.f32 %v360_v53, %v358_v60  ;;  %v385_v8 = vpop.permute.xlu1 %384  ;;  %v383_v9 = vpop.permute.xlu0 %382  ;;  %v1578_v58 = vld [vmem:[%s2445_s2 + $0x10] sm:$0x3] }
  0xb7   : > { %v387_v12 = vsel %vm386_vm3, %v383_v9, %v385_v8  ;;  %v388_v14 = vsel %vm386_vm3, %v385_v8, %v383_v9  ;;  %v2067_v57 = vrot.slane %v1576_v45, %v1807_v2 }
  0xb8   : > { %v334_v18 = vrot.slane %v327_v1, %v1986_v44  ;;  %v289_v19 = vrot.slane %v282_v5, %v1986_v44  ;;  %v365_v20 = vcombine.low %v361_v6, %v362_v4  ;;  %v402_v21 = vmul.f32 %v2003_v56, %v388_v14 }
  0xb9   : > { %v403_v22 = vmul.f32 %v2013_v62, %v387_v12  ;;  %v2077_v1 = vrot.slane %v1576_v45, %v1817_v3  ;;  %v540_v6 = vstv %s2040_s12  ;;  %v2084_v14 = vrot.slane %v1578_v58, %v1807_v2  ;;  %s2250_s12 = sld [smem:[#allocation2 + $0x17]] }
  0xba   : > { %v291_v28 = vadd.f32 %v289_v19, %v234_v61  ;;  %v372_v29 = vrot.slane %v365_v20, %v1986_v44  ;;  %v406_v30 = vmul.f32 %v405_v11, %v402_v21  ;;  %v430_v31 = vpop.permute.xlu1 %429  ;;  %v428_v32 = vpop.permute.xlu0 %427  ;;  %v2091_v20 = vrot.slane %v1578_v58, %v1817_v3 }
  0xbb   : > { %v407_v36 = vmul.f32 %v405_v11, %v403_v22  ;;  %v432_v37 = vsel %vm431_vm4, %v428_v32, %v430_v31  ;;  %v433_v38 = vsel %vm431_vm4, %v430_v31, %v428_v32 }
  0xbc   : > { %v336_v40 = vadd.f32 %v334_v18, %v291_v28  ;;  %v379_v41 = vrot.slane %v372_v29, %v1986_v44  ;;  %v447_v42 = vmul.f32 %v2017_v63, %v432_v37  ;;  %v448_v43 = vmul.f32 %v2029_v15, %v433_v38 }
  0xbd   : > { %v410_v46 = vcombine.low %v406_v30, %v407_v36  ;;  %v585_v37 = vstv %s2072_s19  ;;  %s2305_s19 = sld [smem:[#allocation2 + $0x11]] }
  0xbe   : > { %v381_v48 = vadd.f32 %v379_v41, %v336_v40  ;;  %v451_v49 = vmul.f32 %v450_v24, %v447_v42  ;;  %v452_v50 = vmul.f32 %v450_v24, %v448_v43  ;;  %v475_v51 = vpop.permute.xlu1 %474  ;;  %v473_v52 = vpop.permute.xlu0 %472 }
  0xbf   : > { %v417_v53 = vrot.slane %v410_v46, %v1986_v44  ;;  %v477_v54 = vsel %vm476_vm5, %v473_v52, %v475_v51  ;;  %v478_v55 = vsel %vm476_vm5, %v475_v51, %v473_v52  ;;  %v647_v51 = vstv %s2093_s20  ;;  %s2307_s20 = sld [smem:[#allocation4]] }
  0xc0   : > { %v455_v59 = vcombine.low %v451_v49, %v452_v50  ;;  %v492_v60 = vmul.f32 %v2044_v35, %v477_v54  ;;  %v493_v61 = vmul.f32 %v2051_v39, %v478_v55 }
  0xc1   : > { %v424_v5 = vrot.slane %v417_v53, %v1986_v44 }
  0xc2   : > { %v462_v4 = vrot.slane %v455_v59, %v1986_v44  ;;  %v496_v8 = vmul.f32 %v495_v47, %v492_v60  ;;  %v497_v9 = vmul.f32 %v495_v47, %v493_v61  ;;  %v520_v11 = vpop.permute.xlu1 %519  ;;  %v518_v12 = vpop.permute.xlu0 %517 }
  0xc3   : > { %v426_v17 = vadd.f32 %v424_v5, %v381_v48  ;;  %v522_v18 = vsel %vm521_vm6, %v518_v12, %v520_v11  ;;  %v523_v19 = vsel %vm521_vm6, %v520_v11, %v518_v12 }
  0xc4   : > { %v469_v21 = vrot.slane %v462_v4, %v1986_v44  ;;  %v500_v22 = vcombine.low %v496_v8, %v497_v9  ;;  %v537_v24 = vmul.f32 %v2067_v57, %v522_v18  ;;  %v538_v2 = vmul.f32 %v2077_v1, %v523_v19 }
  0xc5   : > { %v678_v9 = vstv %s2104_s21  ;;  %s2309_s21 = sld [smem:[#allocation4 + $0x4]] }
  0xc6   : > { %v471_v28 = vadd.f32 %v469_v21, %v426_v17  ;;  %v507_v29 = vrot.slane %v500_v22, %v1986_v44  ;;  %v541_v30 = vmul.f32 %v540_v6, %v537_v24  ;;  %v542_v31 = vmul.f32 %v540_v6, %v538_v2  ;;  %v565_v32 = vpop.permute.xlu1 %564  ;;  %v563_v36 = vpop.permute.xlu0 %562 }
  0xc7   : > { %v567_v3 = vsel %vm566_vm7, %v563_v36, %v565_v32  ;;  %v568_v38 = vsel %vm566_vm7, %v565_v32, %v563_v36  ;;  %v625_v22 = vstv %s2109_s22  ;;  %v926_v32 = vstv %s2117_s23  ;;  %s2314_s22 = sld [smem:[#allocation4 + $0x8]]  ;;  %s2316_s23 = sld [smem:[#allocation4 + $0xc]] }
  0xc8   : > { %v514_v40 = vrot.slane %v507_v29, %v1986_v44  ;;  %v545_v41 = vcombine.low %v541_v30, %v542_v31  ;;  %v582_v42 = vmul.f32 %v2084_v14, %v567_v3  ;;  %v583_v43 = vmul.f32 %v2091_v20, %v568_v38 }
  0xc9   : > { %v626_v3 = vmul.f32 %v1841_v7, %v625_v22 }
  0xca   : > { %v516_v45 = vadd.f32 %v514_v40, %v471_v28  ;;  %v552_v46 = vrot.slane %v545_v41, %v1986_v44  ;;  %v586_v47 = vmul.f32 %v585_v37, %v582_v42  ;;  %v587_v48 = vmul.f32 %v585_v37, %v583_v43  ;;  %v641_v49 = vpop.permute.xlu1 %640  ;;  %v639_v50 = vpop.permute.xlu0 %638 }
  0xcb   : > { %v642_v52 = vsel %vm252_vm1, %v639_v50, %v641_v49  ;;  %v643_v53 = vsel %vm252_vm1, %v641_v49, %v639_v50  ;;  %v709_v50 = vstv %s2131_s24  ;;  %s2324_s24 = sld [smem:[#allocation2 + $0x19]] }
  0xcc   : > { %v559_v54 = vrot.slane %v552_v46, %v1986_v44  ;;  %v590_v55 = vcombine.low %v586_v47, %v587_v48  ;;  %v644_v58 = vmul.f32 %v643_v53, %v1952_v26  ;;  %v645_v59 = vmul.f32 %v642_v52, %v1955_v27 }
  0xce   : > { %v561_v60 = vadd.f32 %v559_v54, %v516_v45  ;;  %v597_v61 = vrot.slane %v590_v55, %v1986_v44  ;;  %v648_v5 = vmul.f32 %v647_v51, %v644_v58  ;;  %v649_v6 = vmul.f32 %v647_v51, %v645_v59  ;;  %v672_v4 = vpop.permute.xlu1 %671  ;;  %v670_v8 = vpop.permute.xlu0 %669 }
  0xcf   : > { %v673_v11 = vsel %vm296_vm0, %v670_v8, %v672_v4  ;;  %v674_v12 = vsel %vm296_vm0, %v672_v4, %v670_v8  ;;  %v904_v54 = vstv %s2137_s25  ;;  %s2329_s25 = sld [smem:[#allocation4 + $0x1]] }
  0xd0   : > { %v604_v17 = vrot.slane %v597_v61, %v1986_v44  ;;  %v652_v18 = vcombine.low %v648_v5, %v649_v6  ;;  %v675_v19 = vmul.f32 %v674_v12, %v1938_v23  ;;  %v676_v21 = vmul.f32 %v673_v11, %v1948_v25 }
  0xd2   : > { %v2134_v24 = vadd.f32 %v604_v17, %v561_v60  ;;  %v659_v2 = vrot.slane %v652_v18, %v1986_v44  ;;  %v679_v28 = vmul.f32 %v678_v9, %v675_v19  ;;  %v680_v29 = vmul.f32 %v678_v9, %v676_v21  ;;  %v920_v30 = vpop.permute.xlu1 %919  ;;  %v918_v31 = vpop.permute.xlu0 %917 }
  0xd3   : > { %v921_v36 = vsel %vm252_vm1, %v918_v31, %v920_v30  ;;  %v922_v37 = vsel %vm252_vm1, %v920_v30, %v918_v31  ;;  %v957_v60 = vstv %s2139_s26  ;;  %v1205_v30 = vstv %s2151_s27  ;;  %s2331_s26 = sld [smem:[#allocation2 + $0x21]]  ;;  %s2333_s27 = sld [smem:[#allocation4 + $0x5]] }
  0xd4   : > { %v666_v38 = vrot.slane %v659_v2, %v1986_v44  ;;  %v683_v40 = vcombine.low %v679_v28, %v680_v29  ;;  %v923_v41 = vmul.f32 %v922_v37, %v1952_v26  ;;  %v924_v42 = vmul.f32 %v921_v36, %v1955_v27 }
  0xd5   : > { %v905_v29 = vmul.f32 %v1852_v10, %v904_v54 }
  0xd6   : > { %v703_v43 = vpop.permute.xlu1 %702  ;;  %v701_v45 = vpop.permute.xlu0 %700  ;;  %v690_v46 = vrot.slane %v683_v40, %v1986_v44  ;;  %v927_v47 = vmul.f32 %v926_v32, %v923_v41  ;;  %v928_v48 = vmul.f32 %v926_v32, %v924_v42  ;;  %v668_v49 = vadd.f32 %v666_v38, %v626_v3 }
  0xd7   : > { %v704_v52 = vsel %vm341_vm2, %v701_v45, %v703_v43  ;;  %v705_v53 = vsel %vm341_vm2, %v703_v43, %v701_v45 }
  0xd8   : > { %v697_v7 = vrot.slane %v690_v46, %v1986_v44  ;;  %v931_v51 = vcombine.low %v927_v47, %v928_v48  ;;  %v706_v55 = vmul.f32 %v705_v53, %v1961_v33  ;;  %v707_v58 = vmul.f32 %v704_v52, %v1964_v34 }
  0xd9   : > { %v740_v47 = vstv %s2168_s28  ;;  %s2335_s28 = sld [smem:[#allocation4 + $0x9]] }
  0xda   : > { %v951_v59 = vpop.permute.xlu1 %950  ;;  %v949_v61 = vpop.permute.xlu0 %948  ;;  %v699_v5 = vadd.f32 %v697_v7, %v668_v49  ;;  %v938_v6 = vrot.slane %v931_v51, %v1986_v44  ;;  %v710_v9 = vmul.f32 %v709_v50, %v706_v55  ;;  %v711_v11 = vmul.f32 %v709_v50, %v707_v58 }
  0xdb   : > { %v952_v4 = vsel %vm296_vm0, %v949_v61, %v951_v59  ;;  %v953_v8 = vsel %vm296_vm0, %v951_v59, %v949_v61 }
  0xdc   : > { %v954_v12 = vmul.f32 %v953_v8, %v1938_v23  ;;  %v955_v17 = vmul.f32 %v952_v4, %v1948_v25  ;;  %v945_v18 = vrot.slane %v938_v6, %v1986_v44  ;;  %v714_v19 = vcombine.low %v710_v9, %v711_v11 }
  0xdd   : > { %v1183_v11 = vstv %s2186_s5  ;;  %s2352_s5 = sld [smem:[#allocation2 + $0x1a]] }
  0xde   : > { %v958_v21 = vmul.f32 %v957_v60, %v954_v12  ;;  %v959_v22 = vmul.f32 %v957_v60, %v955_v17  ;;  %v1199_v2 = vpop.permute.xlu1 %1198  ;;  %v1197_v28 = vpop.permute.xlu0 %1196  ;;  %v721_v36 = vrot.slane %v714_v19, %v1986_v44  ;;  %v947_v46 = vadd.f32 %v945_v18, %v905_v29 }
  0xdf   : > { %v1200_v31 = vsel %vm252_vm1, %v1197_v28, %v1199_v2  ;;  %v1201_v32 = vsel %vm252_vm1, %v1199_v2, %v1197_v28  ;;  %v988_v60 = vstv %s2179_s30  ;;  %s2339_s30 = sld [smem:[#allocation4 + $0xd]] }
  0xe0   : > { %v962_v37 = vcombine.low %v958_v21, %v959_v22  ;;  %v1202_v3 = vmul.f32 %v1201_v32, %v1952_v26  ;;  %v1203_v38 = vmul.f32 %v1200_v31, %v1955_v27  ;;  %v728_v40 = vrot.slane %v721_v36, %v1986_v44 }
  0xe1   : > { %v1236_v22 = vstv %s2193_s7  ;;  %v1184_v36 = vmul.f32 %v1865_v13, %v1183_v11  ;;  %s2363_s7 = sld [smem:[#allocation2 + $0x22]] }
  0xe2   : > { %v969_v10 = vrot.slane %v962_v37, %v1986_v44  ;;  %v1206_v41 = vmul.f32 %v1205_v30, %v1202_v3  ;;  %v1207_v42 = vmul.f32 %v1205_v30, %v1203_v38  ;;  %v734_v43 = vpop.permute.xlu1 %733  ;;  %v732_v45 = vpop.permute.xlu0 %731  ;;  %v730_v27 = vadd.f32 %v728_v40, %v699_v5 }
  0xe3   : > { %v735_v48 = vsel %vm386_vm3, %v732_v45, %v734_v43  ;;  %v736_v26 = vsel %vm386_vm3, %v734_v43, %v732_v45 }
  0xe4   : > { %v976_v49 = vrot.slane %v969_v10, %v1986_v44  ;;  %v1210_v50 = vcombine.low %v1206_v41, %v1207_v42  ;;  %v737_v7 = vmul.f32 %v736_v26, %v2003_v56  ;;  %v738_v51 = vmul.f32 %v735_v48, %v2013_v62 }
  0xe5   : > { %v771_v42 = vstv %s2204_s8  ;;  %s2391_s8 = sld [smem:[#allocation2 + $0x23]] }
  0xe6   : > { %v978_v52 = vadd.f32 %v976_v49, %v947_v46  ;;  %v1217_v53 = vrot.slane %v1210_v50, %v1986_v44  ;;  %v741_v54 = vmul.f32 %v740_v47, %v737_v7  ;;  %v982_v55 = vpop.permute.xlu1 %981  ;;  %v980_v58 = vpop.permute.xlu0 %979  ;;  %v742_v59 = vmul.f32 %v740_v47, %v738_v51 }
  0xe7   : > { %v983_v61 = vsel %vm341_vm2, %v980_v58, %v982_v55  ;;  %v984_v5 = vsel %vm341_vm2, %v982_v55, %v980_v58  ;;  %v1019_v51 = vstv %s2216_s9  ;;  %s2401_s9 = sld [smem:[#allocation4 + $0x2]] }
  0xe8   : > { %v1224_v6 = vrot.slane %v1217_v53, %v1986_v44  ;;  %v985_v4 = vmul.f32 %v984_v5, %v1961_v33  ;;  %v986_v8 = vmul.f32 %v983_v61, %v1964_v34  ;;  %v745_v9 = vcombine.low %v741_v54, %v742_v59 }
  0xea   : > { %v989_v12 = vmul.f32 %v988_v60, %v985_v4  ;;  %v990_v17 = vmul.f32 %v988_v60, %v986_v8  ;;  %v1230_v18 = vpop.permute.xlu1 %1229  ;;  %v1228_v19 = vpop.permute.xlu0 %1227  ;;  %v752_v21 = vrot.slane %v745_v9, %v1986_v44  ;;  %v1226_v7 = vadd.f32 %v1224_v6, %v1184_v36 }
  0xeb   : > { %v1231_v2 = vsel %vm296_vm0, %v1228_v19, %v1230_v18  ;;  %v1232_v28 = vsel %vm296_vm0, %v1230_v18, %v1228_v19  ;;  %v1267_v9 = vstv %s2228_s10  ;;  %s2403_s10 = sld [smem:[#allocation4 + $0x6]] }
  0xec   : > { %v993_v29 = vcombine.low %v989_v12, %v990_v17  ;;  %v1233_v30 = vmul.f32 %v1232_v28, %v1938_v23  ;;  %v1234_v31 = vmul.f32 %v1231_v2, %v1948_v25  ;;  %v759_v32 = vrot.slane %v752_v21, %v1986_v44 }
  0xee   : > { %v1000_v37 = vrot.slane %v993_v29, %v1986_v44  ;;  %v1237_v3 = vmul.f32 %v1236_v22, %v1233_v30  ;;  %v1238_v38 = vmul.f32 %v1236_v22, %v1234_v31  ;;  %v765_v40 = vpop.permute.xlu1 %764  ;;  %v763_v10 = vpop.permute.xlu0 %762  ;;  %v761_v41 = vadd.f32 %v759_v32, %v730_v27 }
  0xef   : > { %v766_v43 = vsel %vm431_vm4, %v763_v10, %v765_v40  ;;  %v767_v23 = vsel %vm431_vm4, %v765_v40, %v763_v10  ;;  %v802_v32 = vstv %s2239_s11  ;;  %s2407_s11 = sld [smem:[#allocation4 + $0xe]] }
  0xf0   : > { %v1007_v25 = vrot.slane %v1000_v37, %v1986_v44  ;;  %v1241_v13 = vcombine.low %v1237_v3, %v1238_v38  ;;  %v768_v45 = vmul.f32 %v766_v43, %v2017_v63  ;;  %v769_v46 = vmul.f32 %v767_v23, %v2029_v15 }
  0xf2   : > { %v1009_v47 = vadd.f32 %v1007_v25, %v978_v52  ;;  %v1248_v48 = vrot.slane %v1241_v13, %v1986_v44  ;;  %v772_v26 = vmul.f32 %v771_v42, %v768_v45  ;;  %v773_v27 = vmul.f32 %v771_v42, %v769_v46  ;;  %v1013_v49 = vpop.permute.xlu1 %1012  ;;  %v1011_v50 = vpop.permute.xlu0 %1010 }
  0xf3   : > { %v1014_v53 = vsel %vm386_vm3, %v1011_v50, %v1013_v49  ;;  %v1015_v54 = vsel %vm386_vm3, %v1013_v49, %v1011_v50  ;;  %v1050_v25 = vstv %s2250_s12  ;;  %s1618_s12 = sld [smem:[#allocation4 + $0x3]] }
  0xf4   : > { %v1255_v55 = vrot.slane %v1248_v48, %v1986_v44  ;;  %v776_v52 = vcombine.low %v772_v26, %v773_v27  ;;  %v1016_v58 = vmul.f32 %v1015_v54, %v2003_v56  ;;  %v1017_v59 = vmul.f32 %v1014_v53, %v2013_v62 }
  0xf5   : > { %v1298_v54 = vstv %s2261_s13  ;;  %s1619_s13 = sld [smem:[#allocation4 + $0x7]] }
  0xf6   : > { %v1257_v60 = vadd.f32 %v1255_v55, %v1226_v7  ;;  %v783_v61 = vrot.slane %v776_v52, %v1986_v44  ;;  %v1020_v5 = vmul.f32 %v1019_v51, %v1016_v58  ;;  %v1021_v6 = vmul.f32 %v1019_v51, %v1017_v59  ;;  %v1261_v4 = vpop.permute.xlu1 %1260  ;;  %v1259_v8 = vpop.permute.xlu0 %1258 }
  0xf7   : > { %v1262_v11 = vsel %vm341_vm2, %v1259_v8, %v1261_v4  ;;  %v1263_v12 = vsel %vm341_vm2, %v1261_v4, %v1259_v8 }
  0xf8   : > { %v790_v17 = vrot.slane %v783_v61, %v1986_v44  ;;  %v1024_v18 = vcombine.low %v1020_v5, %v1021_v6  ;;  %v1264_v19 = vmul.f32 %v1263_v12, %v1961_v33  ;;  %v1265_v21 = vmul.f32 %v1262_v11, %v1964_v34 }
  0xf9   : > { %v833_v12 = vstv %s2272_s14  ;;  %s1620_s14 = sld [smem:[#allocation4 + $0xb]] }
  0xfa   : > { %v792_v22 = vadd.f32 %v790_v17, %v761_v41  ;;  %v1031_v2 = vrot.slane %v1024_v18, %v1986_v44  ;;  %v1268_v28 = vmul.f32 %v1267_v9, %v1264_v19  ;;  %v1269_v29 = vmul.f32 %v1267_v9, %v1265_v21  ;;  %v796_v30 = vpop.permute.xlu1 %795  ;;  %v794_v31 = vpop.permute.xlu0 %793 }
  0xfb   : > { %v797_v36 = vsel %vm476_vm5, %v794_v31, %v796_v30  ;;  %v798_v37 = vsel %vm476_vm5, %v796_v30, %v794_v31 }
  0xfc   : > { %v1038_v33 = vrot.slane %v1031_v2, %v1986_v44  ;;  %v1272_v34 = vcombine.low %v1268_v28, %v1269_v29  ;;  %v799_v3 = vmul.f32 %v797_v36, %v2044_v35  ;;  %v800_v38 = vmul.f32 %v798_v37, %v2051_v39 }
  0xfe   : > { %v1040_v40 = vadd.f32 %v1038_v33, %v1009_v47  ;;  %v1279_v10 = vrot.slane %v1272_v34, %v1986_v44  ;;  %v803_v41 = vmul.f32 %v802_v32, %v799_v3  ;;  %v804_v42 = vmul.f32 %v802_v32, %v800_v38  ;;  %v1044_v43 = vpop.permute.xlu1 %1043  ;;  %v1042_v23 = vpop.permute.xlu0 %1041 }
  0xff   : > { %v1045_v13 = vsel %vm431_vm4, %v1042_v23, %v1044_v43  ;;  %v1046_v45 = vsel %vm431_vm4, %v1044_v43, %v1042_v23  ;;  %v1081_v32 = vstv %s2283_s17  ;;  %s1621_s17 = sld [smem:[#allocation4 + $0xf]] }
 0x100   : > { %v1286_v46 = vrot.slane %v1279_v10, %v1986_v44  ;;  %v807_v48 = vcombine.low %v803_v41, %v804_v42  ;;  %v1047_v47 = vmul.f32 %v1045_v13, %v2017_v63  ;;  %v1048_v26 = vmul.f32 %v1046_v45, %v2029_v15 }
 0x102   : > { %v1288_v27 = vadd.f32 %v1286_v46, %v1257_v60  ;;  %v814_v49 = vrot.slane %v807_v48, %v1986_v44  ;;  %v1051_v50 = vmul.f32 %v1050_v25, %v1047_v47  ;;  %v1052_v7 = vmul.f32 %v1050_v25, %v1048_v26  ;;  %v1292_v51 = vpop.permute.xlu1 %1291  ;;  %v1290_v53 = vpop.permute.xlu0 %1289 }
 0x103   : > { %v1293_v55 = vsel %vm386_vm3, %v1290_v53, %v1292_v51  ;;  %v1294_v52 = vsel %vm386_vm3, %v1292_v51, %v1290_v53  ;;  %v1329_v25 = vstv %s2294_s18 }
 0x104   : > { %v821_v58 = vrot.slane %v814_v49, %v1986_v44  ;;  %v1055_v59 = vcombine.low %v1051_v50, %v1052_v7  ;;  %v1295_v60 = vmul.f32 %v1294_v52, %v2003_v56  ;;  %v1296_v61 = vmul.f32 %v1293_v55, %v2013_v62 }
 0x106   : > { %v823_v5 = vadd.f32 %v821_v58, %v792_v22  ;;  %v1062_v6 = vrot.slane %v1055_v59, %v1986_v44  ;;  %v1299_v4 = vmul.f32 %v1298_v54, %v1295_v60  ;;  %v1300_v8 = vmul.f32 %v1298_v54, %v1296_v61  ;;  %v827_v9 = vpop.permute.xlu1 %826  ;;  %v825_v11 = vpop.permute.xlu0 %824 }
 0x107   : > { %v828_v17 = vsel %vm521_vm6, %v825_v11, %v827_v9  ;;  %v829_v18 = vsel %vm521_vm6, %v827_v9, %v825_v11  ;;  %v609_v60 = vstv %s2307_s20  ;;  %v613_v61 = vstv %s2309_s21  ;;  %s224_s20 = scalar_lea.vmem %s2447_s4, %s1627_s29 }
 0x108   : > { %v1069_v56 = vrot.slane %v1062_v6, %v1986_v44  ;;  %v1303_v62 = vcombine.low %v1299_v4, %v1300_v8  ;;  %v830_v19 = vmul.f32 %v828_v17, %v2067_v57  ;;  %v831_v21 = vmul.f32 %v829_v18, %v2077_v1 }
 0x109   : > { %v621_v6 = vstv %s2316_s23  ;;  %v607_v18 = vmax.f32 %v2134_v24, 0.0  ;;  %v896_v24 = vstv %s2335_s28 }
 0x10a   : > { %v1071_v22 = vadd.f32 %v1069_v56, %v1040_v40  ;;  %v1310_v2 = vrot.slane %v1303_v62, %v1986_v44  ;;  %v834_v28 = vmul.f32 %v833_v12, %v830_v19  ;;  %v835_v29 = vmul.f32 %v833_v12, %v831_v21  ;;  %v1075_v30 = vpop.permute.xlu1 %1074  ;;  %v1073_v31 = vpop.permute.xlu0 %1072 }
 0x10b   : > { %v1076_v36 = vsel %vm476_vm5, %v1073_v31, %v1075_v30  ;;  %v1077_v37 = vsel %vm476_vm5, %v1075_v30, %v1073_v31  ;;  %v1112_v56 = vstv %s2324_s24  ;;  %v892_v30 = vstv %s2333_s27 }
 0x10c   : > { %v1317_v33 = vrot.slane %v1310_v2, %v1986_v44  ;;  %v838_v34 = vcombine.low %v834_v28, %v835_v29  ;;  %v1078_v3 = vmul.f32 %v1076_v36, %v2044_v35  ;;  %v1079_v38 = vmul.f32 %v1077_v37, %v2051_v39 }
 0x10d   : > { %v888_v29 = vstv %s2329_s25  ;;  %v1360_v31 = vstv %s2331_s26 }
 0x10e   : > { %v1319_v40 = vadd.f32 %v1317_v33, %v1288_v27  ;;  %v845_v10 = vrot.slane %v838_v34, %v1986_v44  ;;  %v1082_v41 = vmul.f32 %v1081_v32, %v1078_v3  ;;  %v1083_v42 = vmul.f32 %v1081_v32, %v1079_v38  ;;  %v1323_v43 = vpop.permute.xlu1 %1322  ;;  %v1321_v23 = vpop.permute.xlu0 %1320 }
 0x10f   : > { %v1324_v13 = vsel %vm431_vm4, %v1321_v23, %v1323_v43  ;;  %v1325_v45 = vsel %vm431_vm4, %v1323_v43, %v1321_v23  ;;  %v610_v38 = vmul.f32 %v609_v60, %v607_v18  ;;  %v1669_v60 = vld [vmem:[%s1814_s6 + $0x2] ss:$4 sm:$0x3] }
 0x110   : > { %v852_v46 = vrot.slane %v845_v10, %v1986_v44  ;;  %v1086_v48 = vcombine.low %v1082_v41, %v1083_v42  ;;  %v1326_v47 = vmul.f32 %v1324_v13, %v2017_v63  ;;  %v1327_v26 = vmul.f32 %v1325_v45, %v2029_v15 }
 0x111   : > { %v864_v15 = vstv %s2305_s19  ;;  %v900_v10 = vstv %s2339_s30  ;;  %v614_v13 = vmul.f32 %v613_v61, %v607_v18 }
 0x112   : > { %v854_v27 = vadd.f32 %v852_v46, %v823_v5  ;;  %v1093_v49 = vrot.slane %v1086_v48, %v1986_v44  ;;  %v1330_v50 = vmul.f32 %v1329_v25, %v1326_v47  ;;  %v1331_v7 = vmul.f32 %v1329_v25, %v1327_v26  ;;  %v858_v63 = vpop.permute.xlu1 %857  ;;  %v856_v51 = vpop.permute.xlu0 %855 }
 0x113   : > { %v859_v53 = vsel %vm566_vm7, %v856_v51, %v858_v63  ;;  %v860_v54 = vsel %vm566_vm7, %v858_v63, %v856_v51  ;;  %v617_v5 = vstv %s2314_s22  ;;  %v622_v46 = vmul.f32 %v621_v6, %v607_v18  ;;  %v1667_v51 = vld [vmem:[%s1814_s6] ss:$4 sm:$0x3] }
 0x114   : > { %v1100_v55 = vrot.slane %v1093_v49, %v1986_v44  ;;  %v1334_v52 = vcombine.low %v1330_v50, %v1331_v7  ;;  %v861_v58 = vmul.f32 %v859_v53, %v2084_v14  ;;  %v862_v59 = vmul.f32 %v860_v54, %v2091_v20 }
 0x115   : > { %v618_v45 = vmul.f32 %v617_v5, %v607_v18  ;;  %v1143_v48 = vstv %s2352_s5  ;;  %v1391_v53 = vstv %s2363_s7  ;;  %v1670_v5 = vld [vmem:[%s1814_s6 + $0x3] ss:$4 sm:$0x3] }
 0x116   : > { %v2354_v4 = vadd.f32 %v1100_v55, %v1071_v22  ;;  %v1341_v8 = vrot.slane %v1334_v52, %v1986_v44  ;;  %v865_v9 = vmul.f32 %v864_v15, %v861_v58  ;;  %v866_v11 = vmul.f32 %v864_v15, %v862_v59  ;;  %v1106_v12 = vpop.permute.xlu1 %1105  ;;  %v1104_v17 = vpop.permute.xlu0 %1103  ;;  %v1668_v58 = vld [vmem:[%s1814_s6 + $0x1] ss:$4 sm:$0x3]  ;;  %s2405_s6 = sld [smem:[#allocation4 + $0xa]] }
 0x117   : > { %v1107_v62 = vsel %vm521_vm6, %v1104_v17, %v1106_v12  ;;  %v1108_v19 = vsel %vm521_vm6, %v1106_v12, %v1104_v17  ;;  %v611_v15 = vadd.f32 %v1667_v51, %v610_v38  ;;  %v615_v59 = vadd.f32 %v1668_v58, %v614_v13 }
 0x118   : > { %v1348_v21 = vrot.slane %v1341_v8, %v1986_v44  ;;  %v869_v22 = vcombine.low %v865_v9, %v866_v11  ;;  %v1109_v2 = vmul.f32 %v1107_v62, %v2067_v57  ;;  %v1110_v28 = vmul.f32 %v1108_v19, %v2077_v1 }
 0x119   : > { %v619_v61 = vadd.f32 %v1669_v60, %v618_v45  ;;  %v623_v6 = vadd.f32 %v1670_v5, %v622_v46  ;;  %v1167_v13 = vstv %s2401_s9  ;;  %v1450_v60 = vstv %s1619_s13 }
 0x11a   : > { %v2372_v32 = vadd.f32 %v1348_v21, %v1319_v40  ;;  %v876_v36 = vrot.slane %v869_v22, %v1986_v44  ;;  %v1113_v37 = vmul.f32 %v1112_v56, %v1109_v2  ;;  %v1114_v33 = vmul.f32 %v1112_v56, %v1110_v28  ;;  %v1354_v34 = vpop.permute.xlu1 %1353  ;;  %v1352_v3 = vpop.permute.xlu0 %1351 }
 0x11b   : > { %v1355_v41 = vsel %vm476_vm5, %v1352_v3, %v1354_v34  ;;  %v1356_v42 = vsel %vm476_vm5, %v1354_v34, %v1352_v3  ;;  %v1458_v5 = vstv %s1621_s17 }
 0x11c   : > { %v883_v43 = vrot.slane %v876_v36, %v1986_v44  ;;  %v1117_v40 = vcombine.low %v1113_v37, %v1114_v33  ;;  %v1357_v23 = vmul.f32 %v1355_v41, %v2044_v35  ;;  %v1358_v25 = vmul.f32 %v1356_v42, %v2051_v39 }
 0x11e   : > { %v885_v47 = vadd.f32 %v883_v43, %v854_v27  ;;  %v1124_v26 = vrot.slane %v1117_v40, %v1986_v44  ;;  %v1361_v49 = vmul.f32 %v1360_v31, %v1357_v23  ;;  %v1362_v50 = vmul.f32 %v1360_v31, %v1358_v25  ;;  %v1137_v7 = vpop.permute.xlu1 %1136  ;;  %v1135_v63 = vpop.permute.xlu0 %1134 }
 0x11f   : > { %v1138_v35 = vsel %vm566_vm7, %v1135_v63, %v1137_v7  ;;  %v1139_v39 = vsel %vm566_vm7, %v1137_v7, %v1135_v63 }
 0x120   : > { %v886_v27 = vmax.f32 %v885_v47, 0.0  ;;  %v1131_v54 = vrot.slane %v1124_v26, %v1986_v44  ;;  %v1365_v55 = vcombine.low %v1361_v49, %v1362_v50  ;;  %v1140_v52 = vmul.f32 %v1138_v35, %v2084_v14 }
 0x121   : > { %v1141_v8 = vmul.f32 %v1139_v39, %v2091_v20  ;;  %v1171_v47 = vstv %s2403_s10  ;;  %v1175_v26 = vstv %s2405_s6  ;;  %v1179_v49 = vstv %s2407_s11 }
 0x122   : > { %v889_v9 = vmul.f32 %v888_v29, %v886_v27  ;;  %v893_v11 = vmul.f32 %v892_v30, %v886_v27  ;;  %v897_v12 = vmul.f32 %v896_v24, %v886_v27  ;;  %v901_v17 = vmul.f32 %v900_v10, %v886_v27  ;;  %v1385_v18 = vpop.permute.xlu1 %1384 }
 0x123   : > { %v1133_v56 = vadd.f32 %v1131_v54, %v2354_v4  ;;  %v1372_v62 = vrot.slane %v1365_v55, %v1986_v44  ;;  %v1144_v19 = vmul.f32 %v1143_v48, %v1140_v52  ;;  %v1145_v21 = vmul.f32 %v1143_v48, %v1141_v8  ;;  %v1383_v22 = vpop.permute.xlu0 %1382 }
 0x124   : > { %v890_v2 = vadd.f32 %v889_v9, %v611_v15  ;;  %v894_v28 = vadd.f32 %v893_v11, %v615_v59  ;;  %v898_v31 = vadd.f32 %v897_v12, %v619_v61  ;;  %v902_v29 = vadd.f32 %v901_v17, %v623_v6 }
 0x125   : > { %v1379_v4 = vrot.slane %v1372_v62, %v1986_v44  ;;  %v1148_v30 = vcombine.low %v1144_v19, %v1145_v21  ;;  %v1386_v24 = vsel %vm521_vm6, %v1383_v22, %v1385_v18  ;;  %v1387_v36 = vsel %vm521_vm6, %v1385_v18, %v1383_v22 }
 0x126   : > { %v1388_v37 = vmul.f32 %v1386_v24, %v2067_v57  ;;  %v1389_v33 = vmul.f32 %v1387_v36, %v2077_v1  ;;  %v1416_v34 = vpop.permute.xlu1 %1415  ;;  %v1422_v10 = vstv %s2391_s8  ;;  %v1446_v59 = vstv %s1618_s12 }
 0x127   : > { %v1381_v3 = vadd.f32 %v1379_v4, %v2372_v32  ;;  %v1155_v38 = vrot.slane %v1148_v30, %v1986_v44  ;;  %v1414_v41 = vpop.permute.xlu0 %1413  ;;  %v1454_v61 = vstv %s1620_s14 }
 0x128   : > { %v1392_v42 = vmul.f32 %v1391_v53, %v1388_v37  ;;  %v1393_v43 = vmul.f32 %v1391_v53, %v1389_v33  ;;  %v1417_v40 = vsel %vm566_vm7, %v1414_v41, %v1416_v34  ;;  %v1418_v57 = vsel %vm566_vm7, %v1416_v34, %v1414_v41 }
 0x129   : > { %v1162_v1 = vrot.slane %v1155_v38, %v1986_v44  ;;  %v1419_v23 = vmul.f32 %v1417_v40, %v2084_v14  ;;  %v1420_v32 = vmul.f32 %v1418_v57, %v2091_v20 }
 0x12a   : > { %v1396_v25 = vcombine.low %v1392_v42, %v1393_v43 }
 0x12b   : > { %v1164_v45 = vadd.f32 %v1162_v1, %v1133_v56  ;;  %v1423_v46 = vmul.f32 %v1422_v10, %v1419_v23  ;;  %v1424_v48 = vmul.f32 %v1422_v10, %v1420_v32 }
 0x12c   : > { %v1403_v50 = vrot.slane %v1396_v25, %v1986_v44 }
 0x12d   : > { %v1165_v16 = vmax.f32 %v1164_v45, 0.0  ;;  %v1427_v7 = vcombine.low %v1423_v46, %v1424_v48 }
 0x12e   : > { %v1410_v14 = vrot.slane %v1403_v50, %v1986_v44 }
 0x12f   : > { %v1168_v63 = vmul.f32 %v1167_v13, %v1165_v16  ;;  %v1172_v20 = vmul.f32 %v1171_v47, %v1165_v16  ;;  %v1176_v51 = vmul.f32 %v1175_v26, %v1165_v16  ;;  %v1180_v15 = vmul.f32 %v1179_v49, %v1165_v16 }
 0x130   : > { %v1412_v35 = vadd.f32 %v1410_v14, %v1381_v3  ;;  %v1434_v39 = vrot.slane %v1427_v7, %v1986_v44 }
 0x131   : > { %v1169_v53 = vadd.f32 %v1168_v63, %v890_v2  ;;  %v1173_v27 = vadd.f32 %v1172_v20, %v894_v28  ;;  %v1177_v54 = vadd.f32 %v1176_v51, %v898_v31  ;;  %v1181_v55 = vadd.f32 %v1180_v15, %v902_v29 }
 0x132   : > { %v1441_v52 = vrot.slane %v1434_v39, %v1986_v44 }
 0x134   : > { %v1443_v58 = vadd.f32 %v1441_v52, %v1412_v35 }
 0x136   : > { %v1444_v6 = vmax.f32 %v1443_v58, 0.0 }
 0x138   : > { %v1447_v8 = vmul.f32 %v1446_v59, %v1444_v6  ;;  %v1451_v9 = vmul.f32 %v1450_v60, %v1444_v6  ;;  %v1455_v11 = vmul.f32 %v1454_v61, %v1444_v6  ;;  %v1459_v12 = vmul.f32 %v1458_v5, %v1444_v6 }
 0x13a   : > { %v1448_v17 = vadd.f32 %v1447_v8, %v1169_v53  ;;  %v1452_v18 = vadd.f32 %v1451_v9, %v1173_v27  ;;  %v1456_v44 = vadd.f32 %v1455_v11, %v1177_v54  ;;  %v1460_v56 = vadd.f32 %v1459_v12, %v1181_v55 }
 0x13c   : > { %1465 = vst.msk [vmem:[%s224_s20] ss:$4 sm:$0x3] %vm1463_vm8, %v1448_v17  ;;  %1622 = vst.msk [vmem:[%s224_s20 + $0x1] ss:$4 sm:$0x3] %vm1463_vm8, %v1452_v18 }
 0x13d   : > { %1623 = vst.msk [vmem:[%s224_s20 + $0x2] ss:$4 sm:$0x3] %vm1463_vm8, %v1456_v44  ;;  %1624 = vst.msk [vmem:[%s224_s20 + $0x3] ss:$4 sm:$0x3] %vm1463_vm8, %v1460_v56 }
 0x13e PF: > { %s16_s15 = sadd.s32 1, %s1715_s15  }
 0x13f   : > { %p13_p5 = scmp.ge.s32.totalorder %s16_s15, 4  }
 0x141   :  { %15 = sbr.rel (!%p13_p5) target bundleno = 2 (0x2), region = 88 }
 0x148   :  { %1493 = vsyncpa [#allocation3], 1 }
 0x149   :  { %1495 = vsyncpa [#allocation3 + $0x1], 1 }
 0x14a   :  { %1496 = vsyncpa [#allocation5], 1 }

</bundles_post_ra>
